<compile_context>
chip_gen: v7x
topology: tpu7x:2x2x1
jax: 0.10.0
libtpu: 0.0.40
codegen_flags: <defaults>
</compile_context>

<pallas_src>
import functools

import jax
import jax.numpy as jnp
from jax.experimental import pallas as pl
from jax.experimental.pallas import tpu as pltpu

D_PAD = 128      # lane-dense padded feature dim (true hidden dim <= 128)
LN_EPS = 1e-5


# ---------------------------------------------------------------------------
# Fused kernel: embedding linear + L graph-transformer layers, grid over layers
# ---------------------------------------------------------------------------
def _fused_forward_kernel(
    n_heads, head_dim, d_true,
    x_ref, wh_ref, bh_ref, a_ref,          # layer-invariant inputs (resident)
    wq_ref, wk_ref, wv_ref, wo_ref,        # per-layer (streamed over grid)
    wf1_ref, wf2_ref, vec_ref,
    o_ref,                                 # (N, D_PAD) output block = resident h carry
):
    l = pl.program_id(0)

    # lane helpers
    col = jax.lax.broadcasted_iota(jnp.int32, (1, D_PAD), 1)
    dmask = (col < d_true).astype(jnp.float32)        # true-feature lanes
    ones_col = (col == d_true).astype(jnp.float32)    # fused-z column (lane d_true)

    # ---- input embedding (only at the first grid step) -------------------
    @pl.when(l == 0)
    def _():
        o_ref[...] = (
            jnp.dot(x_ref[...], wh_ref[...], preferred_element_type=jnp.float32)
            + bh_ref[...]
        )

    h = o_ref[...]          # (N, D_PAD); padded lanes are exactly zero
    A = a_ref[...]          # (N, N) src x dst edge mask

    vec = vec_ref[...]      # (8, D_PAD) packed per-layer vectors
    bo, g1, b1 = vec[0:1, :], vec[1:2, :], vec[2:3, :]
    bf1, bf2 = vec[3:4, :], vec[4:5, :]
    g2, b2 = vec[5:6, :], vec[6:7, :]

    # ---- multi-head attention (lane-dense; 1/sqrt(hd) folded into wq) ----
    Q = jnp.dot(h, wq_ref[...], preferred_element_type=jnp.float32)
    K = jnp.dot(h, wk_ref[...], preferred_element_type=jnp.float32)
    V = jnp.dot(h, wv_ref[...], preferred_element_type=jnp.float32)
    V_aug = V + ones_col    # ones column at lane d_true -> z falls out of the wV matmul

    attn = jnp.zeros_like(h)
    for hh in range(n_heads):                      # static unroll, all ops full-width
        lo = hh * head_dim
        hmask = ((col >= lo) & (col < lo + head_dim)).astype(jnp.float32)
        # s[i, j] = K_h[src i] . Q_h[dst j]
        s = jnp.einsum("id,jd->ij", K * hmask, Q,
                       preferred_element_type=jnp.float32)
        s = jnp.exp(jnp.clip(s, -5.0, 5.0)) * A
        # P[j, :d_true] = sum_src s * V ; P[j, d_true] = z[j]  (one MXU op)
        P = jnp.einsum("ij,id->jd", s, V_aug,
                       preferred_element_type=jnp.float32)
        z = jnp.maximum(P[:, d_true:d_true + 1], 1e-30)   # guard isolated nodes
        attn = attn + (P * hmask) * pl.reciprocal(z, approx=True)

    # ---- O projection + residual + LayerNorm1 ----------------------------
    h1 = h + jnp.dot(attn, wo_ref[...], preferred_element_type=jnp.float32) + bo
    inv_d = 1.0 / d_true
    mu1 = jnp.sum(h1, axis=-1, keepdims=True) * inv_d
    diff1 = (h1 - mu1) * dmask
    var1 = jnp.sum(diff1 * diff1, axis=-1, keepdims=True) * inv_d
    h1 = diff1 * jax.lax.rsqrt(var1 + LN_EPS) * g1 + b1

    # ---- FFN + residual + LayerNorm2 --------------------------------------
    f = jnp.dot(h1, wf1_ref[...], preferred_element_type=jnp.float32) + bf1
    f = jnp.maximum(f, 0.0)
    f = jnp.dot(f, wf2_ref[...], preferred_element_type=jnp.float32) + bf2
    h2 = h1 + f
    mu2 = jnp.sum(h2, axis=-1, keepdims=True) * inv_d
    diff2 = (h2 - mu2) * dmask
    var2 = jnp.sum(diff2 * diff2, axis=-1, keepdims=True) * inv_d
    o_ref[...] = diff2 * jax.lax.rsqrt(var2 + LN_EPS) * g2 + b2


# ---------------------------------------------------------------------------
# Host-side parameter init / padding / packing
# ---------------------------------------------------------------------------
def _pad2(w, rows, cols):
    out = jnp.zeros((rows, cols), jnp.float32)
    return out.at[: w.shape[0], : w.shape[1]].set(w.astype(jnp.float32))


def init_params(key, n_layers, node_dim, hidden_dim, out_dim, n_heads):
    assert hidden_dim == out_dim, "residual requires hidden_dim == out_dim"
    keys = jax.random.split(key, 2 + n_layers)

    def dense(k, din, dout, scale=0.1):
        return scale * jax.random.normal(k, (din, dout), jnp.float32)

    params = {
        "linear_h_w": dense(keys[0], node_dim, hidden_dim),
        "linear_h_b": jnp.zeros((1, hidden_dim), jnp.float32),
        "layers": [],
    }
    d = hidden_dim
    for li in range(n_layers):
        lk = jax.random.split(keys[2 + li], 6)
        params["layers"].append({
            "wq": dense(lk[0], d, d), "wk": dense(lk[1], d, d),
            "wv": dense(lk[2], d, d), "wo": dense(lk[3], d, d),
            "bo": jnp.zeros((1, d), jnp.float32),
            "g1": jnp.ones((1, d), jnp.float32),
            "b1": jnp.zeros((1, d), jnp.float32),
            "wf1": dense(lk[4], d, 2 * d),
            "bf1": jnp.zeros((1, 2 * d), jnp.float32),
            "wf2": dense(lk[5], 2 * d, d),
            "bf2": jnp.zeros((1, d), jnp.float32),
            "g2": jnp.ones((1, d), jnp.float32),
            "b2": jnp.zeros((1, d), jnp.float32),
        })
    return params


def pack_params(params, n_heads):
    d = params["linear_h_w"].shape[1]
    head_dim = d // n_heads
    assert 2 * d <= D_PAD, "FFN hidden dim must fit in one padded lane tile"
    scale = 1.0 / (head_dim ** 0.5)

    def pad_vec(v):
        return _pad2(v.reshape(1, -1), 1, D_PAD)

    packed = {
        "wh": _pad2(params["linear_h_w"], D_PAD, D_PAD),
        "bh": pad_vec(params["linear_h_b"]),
        "d_true": d,
        "head_dim": head_dim,
    }
    wq, wk, wv, wo, wf1, wf2, vec = [], [], [], [], [], [], []
    for lp in params["layers"]:
        wq.append(_pad2(lp["wq"] * scale, D_PAD, D_PAD))  # fold 1/sqrt(head_dim) into wq
        wk.append(_pad2(lp["wk"], D_PAD, D_PAD))
        wv.append(_pad2(lp["wv"], D_PAD, D_PAD))
        wo.append(_pad2(lp["wo"], D_PAD, D_PAD))
        wf1.append(_pad2(lp["wf1"], D_PAD, D_PAD))        # FFN hidden padded 2d -> 128
        wf2.append(_pad2(lp["wf2"], D_PAD, D_PAD))
        vec.append(jnp.concatenate([
            pad_vec(lp["bo"]), pad_vec(lp["g1"]), pad_vec(lp["b1"]),
            pad_vec(lp["bf1"]), pad_vec(lp["bf2"]),
            pad_vec(lp["g2"]), pad_vec(lp["b2"]),
            jnp.zeros((1, D_PAD), jnp.float32),
        ], axis=0))                                        # (8, D_PAD) per layer
    for name, lst in [("wq", wq), ("wk", wk), ("wv", wv), ("wo", wo),
                      ("wf1", wf1), ("wf2", wf2), ("vec", vec)]:
        packed[name] = jnp.stack(lst, axis=0)
    return packed


# ---------------------------------------------------------------------------
# Forward: one pallas_call for the whole network
# ---------------------------------------------------------------------------
def graph_transformer_forward(node_feat, adj, packed, n_heads):
    n = node_feat.shape[0]
    d_true = packed["d_true"]
    head_dim = packed["head_dim"]
    n_layers = packed["wq"].shape[0]

    x = _pad2(node_feat, n, D_PAD)                     # lane-pad the input features

    kernel = functools.partial(_fused_forward_kernel, n_heads, head_dim, d_true)
    const2 = lambda l: (0, 0)
    per_layer3 = lambda l: (l, 0, 0)

    out = pl.pallas_call(
        kernel,
        out_shape=jax.ShapeDtypeStruct((n, D_PAD), jnp.float32),
        grid_spec=pltpu.PrefetchScalarGridSpec(
            num_scalar_prefetch=0,
            grid=(n_layers,),
            in_specs=[
                pl.BlockSpec((n, D_PAD), const2),                              # x
                pl.BlockSpec((D_PAD, D_PAD), const2),                          # wh
                pl.BlockSpec((1, D_PAD), const2),                              # bh
                pl.BlockSpec((n, n), const2),                                  # adj
                pl.BlockSpec((pl.Squeezed(), D_PAD, D_PAD), per_layer3),       # wq
                pl.BlockSpec((pl.Squeezed(), D_PAD, D_PAD), per_layer3),       # wk
                pl.BlockSpec((pl.Squeezed(), D_PAD, D_PAD), per_layer3),       # wv
                pl.BlockSpec((pl.Squeezed(), D_PAD, D_PAD), per_layer3),       # wo
                pl.BlockSpec((pl.Squeezed(), D_PAD, D_PAD), per_layer3),       # wf1
                pl.BlockSpec((pl.Squeezed(), D_PAD, D_PAD), per_layer3),       # wf2
                pl.BlockSpec((pl.Squeezed(), 8, D_PAD), per_layer3),           # packed vecs
            ],
            out_specs=pl.BlockSpec((n, D_PAD), const2),   # resident across layers (h carry)
        ),
        compiler_params=pltpu.CompilerParams(dimension_semantics=("arbitrary",)),
    )(x, packed["wh"], packed["bh"], adj,
      packed["wq"], packed["wk"], packed["wv"], packed["wo"],
      packed["wf1"], packed["wf2"], packed["vec"])
    return out[:, :d_true]


if __name__ == "__main__":
    N_NODES = 16
    NODE_DIM = 8
    HIDDEN_DIM = 32
    OUT_DIM = 32
    N_HEADS = 4
    N_LAYERS = 2

    key = jax.random.PRNGKey(0)
    k_feat, k_adj, k_param = jax.random.split(key, 3)

    # g.ndata['sim_feature']
    node_feat = jax.random.normal(k_feat, (N_NODES, NODE_DIM), jnp.float32)

    # dense adjacency mask (src, dst) with self-loops so every node has in-degree > 0
    adj = (jax.random.uniform(k_adj, (N_NODES, N_NODES)) < 0.4).astype(jnp.float32)
    adj = jnp.maximum(adj, jnp.eye(N_NODES, dtype=jnp.float32))

    params = init_params(k_param, N_LAYERS, NODE_DIM, HIDDEN_DIM, OUT_DIM, N_HEADS)
    packed = pack_params(params, N_HEADS)

    h_out = graph_transformer_forward(node_feat, adj, packed, N_HEADS)
    h_out = jax.block_until_ready(h_out)

    assert h_out.shape == (N_NODES, OUT_DIM)
    assert bool(jnp.all(jnp.isfinite(h_out)))
    print("KERNEL_OK")
</pallas_src>

<mosaic_0001>
module attributes {stable_mosaic.version = 11 : i64} {
  func.func @_fused_forward_kernel(%arg0: i32, %arg1: memref<16x128xf32, #tpu.memory_space<vmem>>, %arg2: memref<128x128xf32, #tpu.memory_space<vmem>>, %arg3: memref<1x128xf32, #tpu.memory_space<vmem>>, %arg4: memref<16x16xf32, #tpu.memory_space<vmem>>, %arg5: memref<1x128x128xf32, #tpu.memory_space<vmem>>, %arg6: memref<1x128x128xf32, #tpu.memory_space<vmem>>, %arg7: memref<1x128x128xf32, #tpu.memory_space<vmem>>, %arg8: memref<1x128x128xf32, #tpu.memory_space<vmem>>, %arg9: memref<1x128x128xf32, #tpu.memory_space<vmem>>, %arg10: memref<1x128x128xf32, #tpu.memory_space<vmem>>, %arg11: memref<1x8x128xf32, #tpu.memory_space<vmem>>, %arg12: memref<16x128xf32, #tpu.memory_space<vmem>>) attributes {dimension_semantics = [#tpu.dimension_semantics<arbitrary>], iteration_bounds = array<i64: 2>, scalar_prefetch = 0 : i64, scratch_operands = 0 : i64, tpu.core_type = #tpu.core_type<tc>, window_params = [{pipeline_mode = #tpu.pipeline_mode<synchronous>, transform_indices = @transform_0, window_bounds = array<i64: 16, 128>}, {pipeline_mode = #tpu.pipeline_mode<synchronous>, transform_indices = @transform_1, window_bounds = array<i64: 128, 128>}, {pipeline_mode = #tpu.pipeline_mode<synchronous>, transform_indices = @transform_2, window_bounds = array<i64: 1, 128>}, {pipeline_mode = #tpu.pipeline_mode<synchronous>, transform_indices = @transform_3, window_bounds = array<i64: 16, 16>}, {transform_indices = @transform_4, window_bounds = array<i64: 1, 128, 128>}, {transform_indices = @transform_5, window_bounds = array<i64: 1, 128, 128>}, {transform_indices = @transform_6, window_bounds = array<i64: 1, 128, 128>}, {transform_indices = @transform_7, window_bounds = array<i64: 1, 128, 128>}, {transform_indices = @transform_8, window_bounds = array<i64: 1, 128, 128>}, {transform_indices = @transform_9, window_bounds = array<i64: 1, 128, 128>}, {transform_indices = @transform_10, window_bounds = array<i64: 1, 8, 128>}, {pipeline_mode = #tpu.pipeline_mode<synchronous>, transform_indices = @transform_11, window_bounds = array<i64: 16, 128>}]} {
    %0 = tpu.iota {dimensions = array<i32: 1>} : vector<1x128xi32>
    %c32_i32 = arith.constant 32 : i32
    %1 = vector.broadcast %c32_i32 : i32 to vector<1x128xi32>
    %2 = arith.cmpi slt, %0, %1 : vector<1x128xi32>
    %3 = arith.extui %2 : vector<1x128xi1> to vector<1x128xi32>
    %4 = arith.sitofp %3 : vector<1x128xi32> to vector<1x128xf32>
    %c32_i32_0 = arith.constant 32 : i32
    %5 = vector.broadcast %c32_i32_0 : i32 to vector<1x128xi32>
    %6 = arith.cmpi eq, %0, %5 : vector<1x128xi32>
    %7 = arith.extui %6 : vector<1x128xi1> to vector<1x128xi32>
    %8 = arith.sitofp %7 : vector<1x128xi32> to vector<1x128xf32>
    %c0_i32 = arith.constant 0 : i32
    %9 = arith.cmpi eq, %arg0, %c0_i32 : i32
    %10 = arith.extui %9 : i1 to i32
    %c0_i32_1 = arith.constant 0 : i32
    %11 = arith.cmpi ne, %10, %c0_i32_1 : i32
    scf.if %11 {
      %c0_70 = arith.constant 0 : index
      %c0_71 = arith.constant 0 : index
      %203 = vector.load %arg1[%c0_70, %c0_71] : memref<16x128xf32, #tpu.memory_space<vmem>>, vector<16x128xf32>
      %c0_72 = arith.constant 0 : index
      %c0_73 = arith.constant 0 : index
      %204 = vector.load %arg2[%c0_72, %c0_73] : memref<128x128xf32, #tpu.memory_space<vmem>>, vector<128x128xf32>
      %cst_74 = arith.constant dense<0.000000e+00> : vector<16x128xf32>
      %205 = tpu.matmul %203, %204, %cst_74 {dimension_numbers = #tpu.dot_dimension_numbers<[1], [0], [0], [1], [0, 0, 1, 1], [], []>} : vector<16x128xf32>, vector<128x128xf32>, vector<16x128xf32> -> vector<16x128xf32>
      %c0_75 = arith.constant 0 : index
      %c0_76 = arith.constant 0 : index
      %206 = vector.load %arg3[%c0_75, %c0_76] : memref<1x128xf32, #tpu.memory_space<vmem>>, vector<1x128xf32>
      %207 = vector.broadcast %206 : vector<1x128xf32> to vector<16x128xf32>
      %208 = arith.addf %205, %207 : vector<16x128xf32>
      %c0_77 = arith.constant 0 : index
      %c0_78 = arith.constant 0 : index
      %209 = vector.load %arg12[%c0_77, %c0_78] : memref<16x128xf32, #tpu.memory_space<vmem>>, vector<16x128xf32>
      tpu.vector_store %arg12[%c0_77, %c0_78], %208 {strides = array<i32>} : memref<16x128xf32, #tpu.memory_space<vmem>>, vector<16x128xf32>,
    } else {
    }
    %c0 = arith.constant 0 : index
    %c0_2 = arith.constant 0 : index
    %12 = vector.load %arg12[%c0, %c0_2] : memref<16x128xf32, #tpu.memory_space<vmem>>, vector<16x128xf32>
    %c0_3 = arith.constant 0 : index
    %c0_4 = arith.constant 0 : index
    %13 = vector.load %arg4[%c0_3, %c0_4] : memref<16x16xf32, #tpu.memory_space<vmem>>, vector<16x16xf32>
    %c0_5 = arith.constant 0 : index
    %c0_6 = arith.constant 0 : index
    %c0_7 = arith.constant 0 : index
    %14 = vector.load %arg11[%c0_5, %c0_6, %c0_7] : memref<1x8x128xf32, #tpu.memory_space<vmem>>, vector<1x8x128xf32>
    %15 = vector.shape_cast %14 : vector<1x8x128xf32> to vector<8x128xf32>
    %16 = vector.extract_strided_slice %15 {offsets = [0, 0], sizes = [1, 128], strides = [1, 1]} : vector<8x128xf32> to vector<1x128xf32>
    %17 = vector.extract_strided_slice %15 {offsets = [1, 0], sizes = [1, 128], strides = [1, 1]} : vector<8x128xf32> to vector<1x128xf32>
    %18 = vector.extract_strided_slice %15 {offsets = [2, 0], sizes = [1, 128], strides = [1, 1]} : vector<8x128xf32> to vector<1x128xf32>
    %19 = vector.extract_strided_slice %15 {offsets = [3, 0], sizes = [1, 128], strides = [1, 1]} : vector<8x128xf32> to vector<1x128xf32>
    %20 = vector.extract_strided_slice %15 {offsets = [4, 0], sizes = [1, 128], strides = [1, 1]} : vector<8x128xf32> to vector<1x128xf32>
    %21 = vector.extract_strided_slice %15 {offsets = [5, 0], sizes = [1, 128], strides = [1, 1]} : vector<8x128xf32> to vector<1x128xf32>
    %22 = vector.extract_strided_slice %15 {offsets = [6, 0], sizes = [1, 128], strides = [1, 1]} : vector<8x128xf32> to vector<1x128xf32>
    %c0_8 = arith.constant 0 : index
    %c0_9 = arith.constant 0 : index
    %c0_10 = arith.constant 0 : index
    %23 = vector.load %arg5[%c0_8, %c0_9, %c0_10] : memref<1x128x128xf32, #tpu.memory_space<vmem>>, vector<1x128x128xf32>
    %24 = vector.shape_cast %23 : vector<1x128x128xf32> to vector<128x128xf32>
    %cst = arith.constant dense<0.000000e+00> : vector<16x128xf32>
    %25 = tpu.matmul %12, %24, %cst {dimension_numbers = #tpu.dot_dimension_numbers<[1], [0], [0], [1], [0, 0, 1, 1], [], []>} : vector<16x128xf32>, vector<128x128xf32>, vector<16x128xf32> -> vector<16x128xf32>
    %c0_11 = arith.constant 0 : index
    %c0_12 = arith.constant 0 : index
    %c0_13 = arith.constant 0 : index
    %26 = vector.load %arg6[%c0_11, %c0_12, %c0_13] : memref<1x128x128xf32, #tpu.memory_space<vmem>>, vector<1x128x128xf32>
    %27 = vector.shape_cast %26 : vector<1x128x128xf32> to vector<128x128xf32>
    %cst_14 = arith.constant dense<0.000000e+00> : vector<16x128xf32>
    %28 = tpu.matmul %12, %27, %cst_14 {dimension_numbers = #tpu.dot_dimension_numbers<[1], [0], [0], [1], [0, 0, 1, 1], [], []>} : vector<16x128xf32>, vector<128x128xf32>, vector<16x128xf32> -> vector<16x128xf32>
    %c0_15 = arith.constant 0 : index
    %c0_16 = arith.constant 0 : index
    %c0_17 = arith.constant 0 : index
    %29 = vector.load %arg7[%c0_15, %c0_16, %c0_17] : memref<1x128x128xf32, #tpu.memory_space<vmem>>, vector<1x128x128xf32>
    %30 = vector.shape_cast %29 : vector<1x128x128xf32> to vector<128x128xf32>
    %cst_18 = arith.constant dense<0.000000e+00> : vector<16x128xf32>
    %31 = tpu.matmul %12, %30, %cst_18 {dimension_numbers = #tpu.dot_dimension_numbers<[1], [0], [0], [1], [0, 0, 1, 1], [], []>} : vector<16x128xf32>, vector<128x128xf32>, vector<16x128xf32> -> vector<16x128xf32>
    %32 = vector.broadcast %8 : vector<1x128xf32> to vector<16x128xf32>
    %33 = arith.addf %31, %32 : vector<16x128xf32>
    %cst_19 = arith.constant 0.000000e+00 : f32
    %34 = vector.broadcast %cst_19 : f32 to vector<16x128xf32>
    %c0_i32_20 = arith.constant 0 : i32
    %35 = vector.broadcast %c0_i32_20 : i32 to vector<1x128xi32>
    %36 = arith.cmpi sge, %0, %35 : vector<1x128xi32>
    %c8_i32 = arith.constant 8 : i32
    %37 = vector.broadcast %c8_i32 : i32 to vector<1x128xi32>
    %38 = arith.cmpi slt, %0, %37 : vector<1x128xi32>
    %39 = arith.andi %36, %38 : vector<1x128xi1>
    %40 = arith.extui %39 : vector<1x128xi1> to vector<1x128xi32>
    %41 = arith.sitofp %40 : vector<1x128xi32> to vector<1x128xf32>
    %42 = vector.broadcast %41 : vector<1x128xf32> to vector<16x128xf32>
    %43 = arith.mulf %28, %42 : vector<16x128xf32>
    "tpu.trace_start"() <{level = 10 : i32, message = "id,jd->ij"}> : () -> ()
    %cst_21 = arith.constant dense<0.000000e+00> : vector<16x16xf32>
    %44 = tpu.matmul %43, %25, %cst_21 {dimension_numbers = #tpu.dot_dimension_numbers<[1], [1], [0], [0], [0, 0, 1, 0], [], []>} : vector<16x128xf32>, vector<16x128xf32>, vector<16x16xf32> -> vector<16x16xf32>
    %cst_22 = arith.constant -5.000000e+00 : f32
    %cst_23 = arith.constant 5.000000e+00 : f32
    "tpu.trace_stop"() : () -> ()
    %45 = vector.broadcast %cst_22 : f32 to vector<16x16xf32>
    %46 = arith.maximumf %45, %44 : vector<16x16xf32>
    %47 = vector.broadcast %cst_23 : f32 to vector<16x16xf32>
    %48 = arith.minimumf %47, %46 : vector<16x16xf32>
    %49 = math.exp %48 : vector<16x16xf32>
    %50 = arith.mulf %49, %13 : vector<16x16xf32>
    "tpu.trace_start"() <{level = 10 : i32, message = "ij,id->jd"}> : () -> ()
    %cst_24 = arith.constant dense<0.000000e+00> : vector<16x128xf32>
    %51 = tpu.matmul %50, %33, %cst_24 {dimension_numbers = #tpu.dot_dimension_numbers<[0], [0], [1], [1], [0, 1, 1, 1], [], []>} : vector<16x16xf32>, vector<16x128xf32>, vector<16x128xf32> -> vector<16x128xf32>
    "tpu.trace_stop"() : () -> ()
    %52 = vector.extract_strided_slice %51 {offsets = [0, 32], sizes = [16, 1], strides = [1, 1]} : vector<16x128xf32> to vector<16x1xf32>
    %cst_25 = arith.constant 1.000000e-30 : f32
    %53 = vector.broadcast %cst_25 : f32 to vector<16x1xf32>
    %54 = arith.maximumf %52, %53 : vector<16x1xf32>
    %55 = vector.broadcast %41 : vector<1x128xf32> to vector<16x128xf32>
    %56 = arith.mulf %51, %55 : vector<16x128xf32>
    %57 = tpu.reciprocal %54 {approx = true} : vector<16x1xf32> -> vector<16x1xf32>
    %58 = vector.broadcast %57 : vector<16x1xf32> to vector<16x128xf32>
    %59 = arith.mulf %56, %58 : vector<16x128xf32>
    %60 = arith.addf %34, %59 : vector<16x128xf32>
    %c8_i32_26 = arith.constant 8 : i32
    %61 = vector.broadcast %c8_i32_26 : i32 to vector<1x128xi32>
    %62 = arith.cmpi sge, %0, %61 : vector<1x128xi32>
    %c16_i32 = arith.constant 16 : i32
    %63 = vector.broadcast %c16_i32 : i32 to vector<1x128xi32>
    %64 = arith.cmpi slt, %0, %63 : vector<1x128xi32>
    %65 = arith.andi %62, %64 : vector<1x128xi1>
    %66 = arith.extui %65 : vector<1x128xi1> to vector<1x128xi32>
    %67 = arith.sitofp %66 : vector<1x128xi32> to vector<1x128xf32>
    %68 = vector.broadcast %67 : vector<1x128xf32> to vector<16x128xf32>
    %69 = arith.mulf %28, %68 : vector<16x128xf32>
    "tpu.trace_start"() <{level = 10 : i32, message = "id,jd->ij"}> : () -> ()
    %cst_27 = arith.constant dense<0.000000e+00> : vector<16x16xf32>
    %70 = tpu.matmul %69, %25, %cst_27 {dimension_numbers = #tpu.dot_dimension_numbers<[1], [1], [0], [0], [0, 0, 1, 0], [], []>} : vector<16x128xf32>, vector<16x128xf32>, vector<16x16xf32> -> vector<16x16xf32>
    %cst_28 = arith.constant -5.000000e+00 : f32
    %cst_29 = arith.constant 5.000000e+00 : f32
    "tpu.trace_stop"() : () -> ()
    %71 = vector.broadcast %cst_28 : f32 to vector<16x16xf32>
    %72 = arith.maximumf %71, %70 : vector<16x16xf32>
    %73 = vector.broadcast %cst_29 : f32 to vector<16x16xf32>
    %74 = arith.minimumf %73, %72 : vector<16x16xf32>
    %75 = math.exp %74 : vector<16x16xf32>
    %76 = arith.mulf %75, %13 : vector<16x16xf32>
    "tpu.trace_start"() <{level = 10 : i32, message = "ij,id->jd"}> : () -> ()
    %cst_30 = arith.constant dense<0.000000e+00> : vector<16x128xf32>
    %77 = tpu.matmul %76, %33, %cst_30 {dimension_numbers = #tpu.dot_dimension_numbers<[0], [0], [1], [1], [0, 1, 1, 1], [], []>} : vector<16x16xf32>, vector<16x128xf32>, vector<16x128xf32> -> vector<16x128xf32>
    "tpu.trace_stop"() : () -> ()
    %78 = vector.extract_strided_slice %77 {offsets = [0, 32], sizes = [16, 1], strides = [1, 1]} : vector<16x128xf32> to vector<16x1xf32>
    %cst_31 = arith.constant 1.000000e-30 : f32
    %79 = vector.broadcast %cst_31 : f32 to vector<16x1xf32>
    %80 = arith.maximumf %78, %79 : vector<16x1xf32>
    %81 = vector.broadcast %67 : vector<1x128xf32> to vector<16x128xf32>
    %82 = arith.mulf %77, %81 : vector<16x128xf32>
    %83 = tpu.reciprocal %80 {approx = true} : vector<16x1xf32> -> vector<16x1xf32>
    %84 = vector.broadcast %83 : vector<16x1xf32> to vector<16x128xf32>
    %85 = arith.mulf %82, %84 : vector<16x128xf32>
    %86 = arith.addf %60, %85 : vector<16x128xf32>
    %c16_i32_32 = arith.constant 16 : i32
    %87 = vector.broadcast %c16_i32_32 : i32 to vector<1x128xi32>
    %88 = arith.cmpi sge, %0, %87 : vector<1x128xi32>
    %c24_i32 = arith.constant 24 : i32
    %89 = vector.broadcast %c24_i32 : i32 to vector<1x128xi32>
    %90 = arith.cmpi slt, %0, %89 : vector<1x128xi32>
    %91 = arith.andi %88, %90 : vector<1x128xi1>
    %92 = arith.extui %91 : vector<1x128xi1> to vector<1x128xi32>
    %93 = arith.sitofp %92 : vector<1x128xi32> to vector<1x128xf32>
    %94 = vector.broadcast %93 : vector<1x128xf32> to vector<16x128xf32>
    %95 = arith.mulf %28, %94 : vector<16x128xf32>
    "tpu.trace_start"() <{level = 10 : i32, message = "id,jd->ij"}> : () -> ()
    %cst_33 = arith.constant dense<0.000000e+00> : vector<16x16xf32>
    %96 = tpu.matmul %95, %25, %cst_33 {dimension_numbers = #tpu.dot_dimension_numbers<[1], [1], [0], [0], [0, 0, 1, 0], [], []>} : vector<16x128xf32>, vector<16x128xf32>, vector<16x16xf32> -> vector<16x16xf32>
    %cst_34 = arith.constant -5.000000e+00 : f32
    %cst_35 = arith.constant 5.000000e+00 : f32
    "tpu.trace_stop"() : () -> ()
    %97 = vector.broadcast %cst_34 : f32 to vector<16x16xf32>
    %98 = arith.maximumf %97, %96 : vector<16x16xf32>
    %99 = vector.broadcast %cst_35 : f32 to vector<16x16xf32>
    %100 = arith.minimumf %99, %98 : vector<16x16xf32>
    %101 = math.exp %100 : vector<16x16xf32>
    %102 = arith.mulf %101, %13 : vector<16x16xf32>
    "tpu.trace_start"() <{level = 10 : i32, message = "ij,id->jd"}> : () -> ()
    %cst_36 = arith.constant dense<0.000000e+00> : vector<16x128xf32>
    %103 = tpu.matmul %102, %33, %cst_36 {dimension_numbers = #tpu.dot_dimension_numbers<[0], [0], [1], [1], [0, 1, 1, 1], [], []>} : vector<16x16xf32>, vector<16x128xf32>, vector<16x128xf32> -> vector<16x128xf32>
    "tpu.trace_stop"() : () -> ()
    %104 = vector.extract_strided_slice %103 {offsets = [0, 32], sizes = [16, 1], strides = [1, 1]} : vector<16x128xf32> to vector<16x1xf32>
    %cst_37 = arith.constant 1.000000e-30 : f32
    %105 = vector.broadcast %cst_37 : f32 to vector<16x1xf32>
    %106 = arith.maximumf %104, %105 : vector<16x1xf32>
    %107 = vector.broadcast %93 : vector<1x128xf32> to vector<16x128xf32>
    %108 = arith.mulf %103, %107 : vector<16x128xf32>
    %109 = tpu.reciprocal %106 {approx = true} : vector<16x1xf32> -> vector<16x1xf32>
    %110 = vector.broadcast %109 : vector<16x1xf32> to vector<16x128xf32>
    %111 = arith.mulf %108, %110 : vector<16x128xf32>
    %112 = arith.addf %86, %111 : vector<16x128xf32>
    %c24_i32_38 = arith.constant 24 : i32
    %113 = vector.broadcast %c24_i32_38 : i32 to vector<1x128xi32>
    %114 = arith.cmpi sge, %0, %113 : vector<1x128xi32>
    %c32_i32_39 = arith.constant 32 : i32
    %115 = vector.broadcast %c32_i32_39 : i32 to vector<1x128xi32>
    %116 = arith.cmpi slt, %0, %115 : vector<1x128xi32>
    %117 = arith.andi %114, %116 : vector<1x128xi1>
    %118 = arith.extui %117 : vector<1x128xi1> to vector<1x128xi32>
    %119 = arith.sitofp %118 : vector<1x128xi32> to vector<1x128xf32>
    %120 = vector.broadcast %119 : vector<1x128xf32> to vector<16x128xf32>
    %121 = arith.mulf %28, %120 : vector<16x128xf32>
    "tpu.trace_start"() <{level = 10 : i32, message = "id,jd->ij"}> : () -> ()
    %cst_40 = arith.constant dense<0.000000e+00> : vector<16x16xf32>
    %122 = tpu.matmul %121, %25, %cst_40 {dimension_numbers = #tpu.dot_dimension_numbers<[1], [1], [0], [0], [0, 0, 1, 0], [], []>} : vector<16x128xf32>, vector<16x128xf32>, vector<16x16xf32> -> vector<16x16xf32>
    %cst_41 = arith.constant -5.000000e+00 : f32
    %cst_42 = arith.constant 5.000000e+00 : f32
    "tpu.trace_stop"() : () -> ()
    %123 = vector.broadcast %cst_41 : f32 to vector<16x16xf32>
    %124 = arith.maximumf %123, %122 : vector<16x16xf32>
    %125 = vector.broadcast %cst_42 : f32 to vector<16x16xf32>
    %126 = arith.minimumf %125, %124 : vector<16x16xf32>
    %127 = math.exp %126 : vector<16x16xf32>
    %128 = arith.mulf %127, %13 : vector<16x16xf32>
    "tpu.trace_start"() <{level = 10 : i32, message = "ij,id->jd"}> : () -> ()
    %cst_43 = arith.constant dense<0.000000e+00> : vector<16x128xf32>
    %129 = tpu.matmul %128, %33, %cst_43 {dimension_numbers = #tpu.dot_dimension_numbers<[0], [0], [1], [1], [0, 1, 1, 1], [], []>} : vector<16x16xf32>, vector<16x128xf32>, vector<16x128xf32> -> vector<16x128xf32>
    "tpu.trace_stop"() : () -> ()
    %130 = vector.extract_strided_slice %129 {offsets = [0, 32], sizes = [16, 1], strides = [1, 1]} : vector<16x128xf32> to vector<16x1xf32>
    %cst_44 = arith.constant 1.000000e-30 : f32
    %131 = vector.broadcast %cst_44 : f32 to vector<16x1xf32>
    %132 = arith.maximumf %130, %131 : vector<16x1xf32>
    %133 = vector.broadcast %119 : vector<1x128xf32> to vector<16x128xf32>
    %134 = arith.mulf %129, %133 : vector<16x128xf32>
    %135 = tpu.reciprocal %132 {approx = true} : vector<16x1xf32> -> vector<16x1xf32>
    %136 = vector.broadcast %135 : vector<16x1xf32> to vector<16x128xf32>
    %137 = arith.mulf %134, %136 : vector<16x128xf32>
    %138 = arith.addf %112, %137 : vector<16x128xf32>
    %c0_45 = arith.constant 0 : index
    %c0_46 = arith.constant 0 : index
    %c0_47 = arith.constant 0 : index
    %139 = vector.load %arg8[%c0_45, %c0_46, %c0_47] : memref<1x128x128xf32, #tpu.memory_space<vmem>>, vector<1x128x128xf32>
    %140 = vector.shape_cast %139 : vector<1x128x128xf32> to vector<128x128xf32>
    %cst_48 = arith.constant dense<0.000000e+00> : vector<16x128xf32>
    %141 = tpu.matmul %138, %140, %cst_48 {dimension_numbers = #tpu.dot_dimension_numbers<[1], [0], [0], [1], [0, 0, 1, 1], [], []>} : vector<16x128xf32>, vector<128x128xf32>, vector<16x128xf32> -> vector<16x128xf32>
    %142 = arith.addf %12, %141 : vector<16x128xf32>
    %143 = vector.broadcast %16 : vector<1x128xf32> to vector<16x128xf32>
    %144 = arith.addf %142, %143 : vector<16x128xf32>
    %cst_49 = arith.constant dense<0.000000e+00> : vector<16xf32>
    %145 = vector.multi_reduction <add>, %144, %cst_49 [1] : vector<16x128xf32> to vector<16xf32>
    %146 = vector.shape_cast %145 : vector<16xf32> to vector<16x1xf32>
    %cst_50 = arith.constant 3.125000e-02 : f32
    %147 = vector.broadcast %cst_50 : f32 to vector<16x1xf32>
    %148 = arith.mulf %146, %147 : vector<16x1xf32>
    %149 = vector.broadcast %148 : vector<16x1xf32> to vector<16x128xf32>
    %150 = arith.subf %144, %149 : vector<16x128xf32>
    %151 = vector.broadcast %4 : vector<1x128xf32> to vector<16x128xf32>
    %152 = arith.mulf %150, %151 : vector<16x128xf32>
    %153 = arith.mulf %152, %152 : vector<16x128xf32>
    %cst_51 = arith.constant dense<0.000000e+00> : vector<16xf32>
    %154 = vector.multi_reduction <add>, %153, %cst_51 [1] : vector<16x128xf32> to vector<16xf32>
    %155 = vector.shape_cast %154 : vector<16xf32> to vector<16x1xf32>
    %cst_52 = arith.constant 3.125000e-02 : f32
    %156 = vector.broadcast %cst_52 : f32 to vector<16x1xf32>
    %157 = arith.mulf %155, %156 : vector<16x1xf32>
    %cst_53 = arith.constant 9.99999974E-6 : f32
    %158 = vector.broadcast %cst_53 : f32 to vector<16x1xf32>
    %159 = arith.addf %157, %158 : vector<16x1xf32>
    %160 = math.rsqrt %159 : vector<16x1xf32>
    %161 = vector.broadcast %160 : vector<16x1xf32> to vector<16x128xf32>
    %162 = arith.mulf %152, %161 : vector<16x128xf32>
    %163 = vector.broadcast %17 : vector<1x128xf32> to vector<16x128xf32>
    %164 = arith.mulf %162, %163 : vector<16x128xf32>
    %165 = vector.broadcast %18 : vector<1x128xf32> to vector<16x128xf32>
    %166 = arith.addf %164, %165 : vector<16x128xf32>
    %c0_54 = arith.constant 0 : index
    %c0_55 = arith.constant 0 : index
    %c0_56 = arith.constant 0 : index
    %167 = vector.load %arg9[%c0_54, %c0_55, %c0_56] : memref<1x128x128xf32, #tpu.memory_space<vmem>>, vector<1x128x128xf32>
    %168 = vector.shape_cast %167 : vector<1x128x128xf32> to vector<128x128xf32>
    %cst_57 = arith.constant dense<0.000000e+00> : vector<16x128xf32>
    %169 = tpu.matmul %166, %168, %cst_57 {dimension_numbers = #tpu.dot_dimension_numbers<[1], [0], [0], [1], [0, 0, 1, 1], [], []>} : vector<16x128xf32>, vector<128x128xf32>, vector<16x128xf32> -> vector<16x128xf32>
    %170 = vector.broadcast %19 : vector<1x128xf32> to vector<16x128xf32>
    %171 = arith.addf %169, %170 : vector<16x128xf32>
    %cst_58 = arith.constant 0.000000e+00 : f32
    %172 = vector.broadcast %cst_58 : f32 to vector<16x128xf32>
    %173 = arith.maximumf %171, %172 : vector<16x128xf32>
    %c0_59 = arith.constant 0 : index
    %c0_60 = arith.constant 0 : index
    %c0_61 = arith.constant 0 : index
    %174 = vector.load %arg10[%c0_59, %c0_60, %c0_61] : memref<1x128x128xf32, #tpu.memory_space<vmem>>, vector<1x128x128xf32>
    %175 = vector.shape_cast %174 : vector<1x128x128xf32> to vector<128x128xf32>
    %cst_62 = arith.constant dense<0.000000e+00> : vector<16x128xf32>
    %176 = tpu.matmul %173, %175, %cst_62 {dimension_numbers = #tpu.dot_dimension_numbers<[1], [0], [0], [1], [0, 0, 1, 1], [], []>} : vector<16x128xf32>, vector<128x128xf32>, vector<16x128xf32> -> vector<16x128xf32>
    %177 = vector.broadcast %20 : vector<1x128xf32> to vector<16x128xf32>
    %178 = arith.addf %176, %177 : vector<16x128xf32>
    %179 = arith.addf %166, %178 : vector<16x128xf32>
    %cst_63 = arith.constant dense<0.000000e+00> : vector<16xf32>
    %180 = vector.multi_reduction <add>, %179, %cst_63 [1] : vector<16x128xf32> to vector<16xf32>
    %181 = vector.shape_cast %180 : vector<16xf32> to vector<16x1xf32>
    %cst_64 = arith.constant 3.125000e-02 : f32
    %182 = vector.broadcast %cst_64 : f32 to vector<16x1xf32>
    %183 = arith.mulf %181, %182 : vector<16x1xf32>
    %184 = vector.broadcast %183 : vector<16x1xf32> to vector<16x128xf32>
    %185 = arith.subf %179, %184 : vector<16x128xf32>
    %186 = vector.broadcast %4 : vector<1x128xf32> to vector<16x128xf32>
    %187 = arith.mulf %185, %186 : vector<16x128xf32>
    %188 = arith.mulf %187, %187 : vector<16x128xf32>
    %cst_65 = arith.constant dense<0.000000e+00> : vector<16xf32>
    %189 = vector.multi_reduction <add>, %188, %cst_65 [1] : vector<16x128xf32> to vector<16xf32>
    %190 = vector.shape_cast %189 : vector<16xf32> to vector<16x1xf32>
    %cst_66 = arith.constant 3.125000e-02 : f32
    %191 = vector.broadcast %cst_66 : f32 to vector<16x1xf32>
    %192 = arith.mulf %190, %191 : vector<16x1xf32>
    %cst_67 = arith.constant 9.99999974E-6 : f32
    %193 = vector.broadcast %cst_67 : f32 to vector<16x1xf32>
    %194 = arith.addf %192, %193 : vector<16x1xf32>
    %195 = math.rsqrt %194 : vector<16x1xf32>
    %196 = vector.broadcast %195 : vector<16x1xf32> to vector<16x128xf32>
    %197 = arith.mulf %187, %196 : vector<16x128xf32>
    %198 = vector.broadcast %21 : vector<1x128xf32> to vector<16x128xf32>
    %199 = arith.mulf %197, %198 : vector<16x128xf32>
    %200 = vector.broadcast %22 : vector<1x128xf32> to vector<16x128xf32>
    %201 = arith.addf %199, %200 : vector<16x128xf32>
    %c0_68 = arith.constant 0 : index
    %c0_69 = arith.constant 0 : index
    %202 = vector.load %arg12[%c0_68, %c0_69] : memref<16x128xf32, #tpu.memory_space<vmem>>, vector<16x128xf32>
    tpu.vector_store %arg12[%c0_68, %c0_69], %201 {strides = array<i32>} : memref<16x128xf32, #tpu.memory_space<vmem>>, vector<16x128xf32>,
    return
  }
  func.func @transform_0(%arg0: i32) -> (i32, i32) {
    %c0_i32 = arith.constant 0 : i32
    %c0_i32_0 = arith.constant 0 : i32
    %c0_i32_1 = arith.constant 0 : i32
    return %c0_i32, %c0_i32_0 : i32, i32
  }
  func.func @transform_1(%arg0: i32) -> (i32, i32) {
    %c0_i32 = arith.constant 0 : i32
    %c0_i32_0 = arith.constant 0 : i32
    %c0_i32_1 = arith.constant 0 : i32
    return %c0_i32, %c0_i32_0 : i32, i32
  }
  func.func @transform_2(%arg0: i32) -> (i32, i32) {
    %c0_i32 = arith.constant 0 : i32
    %c0_i32_0 = arith.constant 0 : i32
    %c0_i32_1 = arith.constant 0 : i32
    return %c0_i32, %c0_i32_0 : i32, i32
  }
  func.func @transform_3(%arg0: i32) -> (i32, i32) {
    %c0_i32 = arith.constant 0 : i32
    %c0_i32_0 = arith.constant 0 : i32
    %c0_i32_1 = arith.constant 0 : i32
    return %c0_i32, %c0_i32_0 : i32, i32
  }
  func.func @transform_4(%arg0: i32) -> (i32, i32, i32) {
    %c0_i32 = arith.constant 0 : i32
    %c0_i32_0 = arith.constant 0 : i32
    %c0_i32_1 = arith.constant 0 : i32
    return %arg0, %c0_i32, %c0_i32_0 : i32, i32, i32
  }
  func.func @transform_5(%arg0: i32) -> (i32, i32, i32) {
    %c0_i32 = arith.constant 0 : i32
    %c0_i32_0 = arith.constant 0 : i32
    %c0_i32_1 = arith.constant 0 : i32
    return %arg0, %c0_i32, %c0_i32_0 : i32, i32, i32
  }
  func.func @transform_6(%arg0: i32) -> (i32, i32, i32) {
    %c0_i32 = arith.constant 0 : i32
    %c0_i32_0 = arith.constant 0 : i32
    %c0_i32_1 = arith.constant 0 : i32
    return %arg0, %c0_i32, %c0_i32_0 : i32, i32, i32
  }
  func.func @transform_7(%arg0: i32) -> (i32, i32, i32) {
    %c0_i32 = arith.constant 0 : i32
    %c0_i32_0 = arith.constant 0 : i32
    %c0_i32_1 = arith.constant 0 : i32
    return %arg0, %c0_i32, %c0_i32_0 : i32, i32, i32
  }
  func.func @transform_8(%arg0: i32) -> (i32, i32, i32) {
    %c0_i32 = arith.constant 0 : i32
    %c0_i32_0 = arith.constant 0 : i32
    %c0_i32_1 = arith.constant 0 : i32
    return %arg0, %c0_i32, %c0_i32_0 : i32, i32, i32
  }
  func.func @transform_9(%arg0: i32) -> (i32, i32, i32) {
    %c0_i32 = arith.constant 0 : i32
    %c0_i32_0 = arith.constant 0 : i32
    %c0_i32_1 = arith.constant 0 : i32
    return %arg0, %c0_i32, %c0_i32_0 : i32, i32, i32
  }
  func.func @transform_10(%arg0: i32) -> (i32, i32, i32) {
    %c0_i32 = arith.constant 0 : i32
    %c0_i32_0 = arith.constant 0 : i32
    %c0_i32_1 = arith.constant 0 : i32
    return %arg0, %c0_i32, %c0_i32_0 : i32, i32, i32
  }
  func.func @transform_11(%arg0: i32) -> (i32, i32) {
    %c0_i32 = arith.constant 0 : i32
    %c0_i32_0 = arith.constant 0 : i32
    %c0_i32_1 = arith.constant 0 : i32
    return %c0_i32, %c0_i32_0 : i32, i32
  }
}

</mosaic_0001>

<bundles_post_ra>
// kernel: tpu_custom_call.1
= control target key start
LH: loop header
LB: loop body
LE: loop exit
PB: predicated region body
PF: predicated region fallthrough
CT: control target
= control target key end

     0   :  { %s4580_s0 = inlined_call_operand.hbm [shape: f32[16,128], index: 0, kind: input, shape index: {}]   ;;  %s4581_s1 = inlined_call_operand.hbm [shape: f32[128,128], index: 1, kind: input, shape index: {}]   ;;  %s4582_s2 = inlined_call_operand.vmem [shape: f32[1,128], index: 2, kind: input, shape index: {}]   ;;  %s4583_s3 = inlined_call_operand.hbm [shape: f32[16,16], index: 3, kind: input, shape index: {}]   ;;  %s4584_s4 = inlined_call_operand.hbm [shape: f32[2,128,128], index: 4, kind: input, shape index: {}]   ;;  %s4585_s5 = inlined_call_operand.hbm [shape: f32[2,128,128], index: 5, kind: input, shape index: {}]   ;;  %s4586_s6 = inlined_call_operand.hbm [shape: f32[2,128,128], index: 6, kind: input, shape index: {}]   ;;  %s4587_s7 = inlined_call_operand.hbm [shape: f32[2,128,128], index: 7, kind: input, shape index: {}]   ;;  %s4588_s8 = inlined_call_operand.hbm [shape: f32[2,128,128], index: 8, kind: input, shape index: {}]   ;;  %s4589_s9 = inlined_call_operand.hbm [shape: f32[2,128,128], index: 9, kind: input, shape index: {}]   ;;  %s4590_s10 = inlined_call_operand.vmem [shape: f32[2,8,128], index: 10, kind: input, shape index: {}]   ;;  %s4591_s11 = inlined_call_operand.hbm [shape: f32[16,128], index: 11, kind: output, shape index: {}]  }
   0x1   :  { %4609 = sst [smem:[#allocation27_spill]] %s4581_s1 }
   0x2   :  { %4610 = sst [smem:[#allocation28_spill]] %s4582_s2 }
   0x3   :  { %4611 = sst [smem:[#allocation29_spill]] %s4584_s4 }
   0x4   :  { %4612 = sst [smem:[#allocation30_spill]] %s4586_s6 }
   0x5   :  { %4613 = sst [smem:[#allocation31_spill]] %s4588_s8 }
   0x6   :  { %4614 = sst [smem:[#allocation32_spill]] %s4590_s10 }
   0x7   :  { %4615 = sst [smem:[#allocation33_spill]] %s4591_s11 }
   0x8   :  { %16 = vsyncpa [#allocation3], 0 }
   0x9   :  { %17 = vsyncpa [#allocation6], 0 }
   0xa   :  { %18 = vsyncpa [#allocation9], 0 }
   0xb   :  { %20 = vsyncpa [#allocation9 + $0x1], 0 }
   0xc   :  { %21 = vsyncpa [#allocation12], 0 }
   0xd   :  { %23 = vsyncpa [#allocation12 + $0x1], 0 }
   0xe   :  { %24 = vsyncpa [#allocation15], 0 }
   0xf   :  { %26 = vsyncpa [#allocation15 + $0x1], 0 }
  0x10   :  { %27 = vsyncpa [#allocation4], 0  ;;  %s3868_s17 = smov 0   ;;  %s3870_s18 = smov 0  }
  0x11   :  { %s3872_s19 = smov 0   ;;  %s3874_s20 = smov 0  }
  0x12 LB: > { %4616 = sst [smem:[#allocation24_spill]] %s3786_s19  ;;  %s3887_s21 = sadd.s32 4294967295, %s3790_s20   ;;  %s3790_s20 = sphi %s3874_s20, %s4650_s20   ;;  %s3786_s19 = sphi %s3872_s19, %s4652_s19   ;;  %s3782_s18 = sphi %s3870_s18, %s4654_s18   ;;  %s3778_s17 = sphi %s3868_s17, %s4653_s17  }
  0x13   : > { %s3890_s22 = sadd.s32 1, %s3790_s20   ;;  %s124_s24 = sadd.s32 1, %s3786_s19 }
  0x14   : > { %4617 = sst [smem:[#allocation25_spill]] %s3890_s22  ;;  %s121_s23 = ssub.s32 %s3790_s20, %s3890_s22 }
  0x15   : > { %p122_p0 = scmp.eq.s32.totalorder %s121_s23, 0  ;;  %p131_p1 = scmp.ne.s32.totalorder %s3786_s19, %s3782_s18 }
  0x16   : > { %p132_p2 = scmp.eq.s32.totalorder %s3790_s20, 0  ;;  %p137_p3 = scmp.ne.s32.totalorder %s3782_s18, %s3778_s17 }
  0x17   : > { %s3900_s25 = scalar_select %p122_p0, %s3786_s19, %s124_s24  }
  0x18   : > { %p3902_p4 = por %p132_p2, %p131_p1  ;;  %p4593_p5 = scmp.eq.s32.totalorder %s3887_s21, 0 }
  0x19   : > { %4618 = sst [smem:[#allocation26_spill]] %s3900_s25  ;;  %p2513_p6 = scmp.ge.s32.totalorder %s3790_s20, 1 }
  0x1a   : > { %p325_p7 = scmp.lt.s32.totalorder %s3790_s20, 3  ;;  %p3911_p8 = por %p4593_p5, %p137_p3 }
  0x1b   : > { %s3792_s29 = smov [#allocation5]   ;;  %p3356_p13 = scmp.lt.s32.totalorder %s3790_s20, 2 }
  0x1c   : > { %s4620_s27 = scalar_select %p3911_p8, 1, 0 }
  0x1d   : > { %p3916_p10 = pnand %p2513_p6, %p325_p7  ;;  %s350_s30 = sshll.u32 %s3792_s29, 4  ;;  %s351_s30 = int_to_ptr.vmem [resolvable:$true] %s350_s30 }
  0x1e   : > { %s3930_s13 = sand.u32 1, %s3790_s20   ;;  %s382_s14 = sand.u32 1, %s3786_s19  }
  0x1f   : > { %s4621_s28 = scalar_select %p3916_p10, 1, 0 }
  0x20   : > { %p3324_p11 = pneg %p3916_p10  ;;  %p3935_p0 = pnand %p3356_p13, %p3902_p4 }
  0x21   : > { %s4624_s1 = sld [smem:[#allocation27_spill]] }
  0x22   : > { %p3924_p12 = pnand %p3324_p11, %p4593_p5 }
  0x23   : > { %s4623_s15 = scalar_select %p3935_p0, 1, 0 }
  0x24   : > { %s4622_s12 = scalar_select %p3924_p12, 1, 0 }
  0x25   : > { %p3947_p2 = pneg %p3924_p12 }
  0x27   : > { %s3446_s23 = scalar_lea.hbm %s4624_s1, 2048 }
  0x28   : > { %p3447_p1 = scmp.ne.s32.totalorder %s4624_s1, %s3446_s23  ;;  %p3453_p6 = scmp.lt.u32.totalorder %s3446_s23, %s4624_s1 }
  0x29   : > { %s4625_s25 = scalar_select %p3947_p2, 1, 0 }
  0x2a   : > { %p3449_p3 = pnand %p3947_p2, %p3447_p1 }
  0x2c   : > { %p3450_p4 = pneg %p3449_p3 }
  0x2e   : > { %p3455_p7 = pnand %p3453_p6, %p3450_p4 }
  0x30   : > { %3458 = shalt.err (!%p3455_p7)
}
  0x31   : > { %s3459_s16 = scalar_lea.vmem %s351_s30, 2048  ;;  %p3467_p5 = scmp.lt.s32.totalorder %s351_s30, %s351_s30 }
  0x32   : > { %p3460_p11 = scmp.ne.s32.totalorder %s351_s30, %s3459_s16  ;;  %p3468_p8 = scmp.lt.s32.totalorder %s3459_s16, %s3459_s16 }
  0x34   : > { %p3462_p13 = pnand %p3460_p11, %p3947_p2  ;;  %p3469_p10 = por %p3468_p8, %p3467_p5 }
  0x36   : > { %p3463_p9 = pneg %p3462_p13 }
  0x38   : > { %p3470_p0 = pnand %p3469_p10, %p3463_p9 }
  0x3a   : > { %3473 = shalt.err (!%p3470_p0)
}
  0x3b   : > { %s3793_s17 = smov 128   ;;  %s3794_s19 = smov 8  }
  0x3c   : > { %3330 = dma.hbm_to_vmem [thread:$0]  (!%p3924_p12), %s4624_s1, 2048, %s351_s30, [#allocation6], %s3793_s17, %s3793_s17, %s3794_s19  }
  0x3d   : > { %s3966_s29 = sshll.u32 %s382_s14, 7  ;;  %s3969_s26 = sshll.u32 %s3790_s20, 11 }
  0x3e   : > { %s4626_s4 = sld [smem:[#allocation29_spill]]  ;;  %s384_s2 = scalar_lea.vmem [#allocation8], %s3966_s29 }
  0x3f   : > { %s391_s10 = sshll.u32 %s384_s2, 4  ;;  %p4627_p8 = scmp.ne.s32.totalorder %s4623_s15, 0  ;;  %s3978_s10 = int_to_ptr.vmem [resolvable:$true] %s391_s10 }
  0x41   : > { %p3985_p9 = pneg %p4627_p8 }
  0x43   : > { %s4628_s20 = scalar_select %p3985_p9, 1, 0 }
  0x44   : > { %s3975_s11 = scalar_lea.hbm %s4626_s4, %s3969_s26  ;;  %s3479_s24 = scalar_lea.hbm %s4626_s4, 4096 }
  0x45   : > { %s3474_s14 = scalar_lea.hbm %s3975_s11, 2048  ;;  %p3480_p1 = scmp.lt.u32.totalorder %s3975_s11, %s4626_s4 }
  0x46   : > { %p3475_p5 = scmp.ne.s32.totalorder %s3975_s11, %s3474_s14  ;;  %p3481_p3 = scmp.lt.u32.totalorder %s3479_s24, %s3474_s14 }
  0x47   : > { %p3483_p6 = scmp.lt.u32.totalorder %s3474_s14, %s3975_s11 }
  0x48   : > { %p3477_p10 = pnand %p3985_p9, %p3475_p5  ;;  %p3482_p4 = por %p3481_p3, %p3480_p1 }
  0x4a   : > { %p3478_p0 = pneg %p3477_p10  ;;  %p3484_p7 = por %p3483_p6, %p3482_p4 }
  0x4c   : > { %p3485_p11 = pnand %p3484_p7, %p3478_p0 }
  0x4e   : > { %3488 = shalt.err (!%p3485_p11)
}
  0x4f   : > { %s3489_s30 = scalar_lea.vmem %s3978_s10, 2048  ;;  %s3795_s22 = smov [#allocation8]  }
  0x50   : > { %p3490_p13 = scmp.ne.s32.totalorder %s3978_s10, %s3489_s30  ;;  %s3494_s23 = sshll.u32 %s3795_s22, 4  ;;  %s3495_s23 = int_to_ptr.vmem [resolvable:$false] %s3494_s23 }
  0x51   : > { %s3496_s16 = scalar_lea.vmem %s3495_s23, 4096  ;;  %p3497_p12 = scmp.lt.s32.totalorder %s3978_s10, %s3495_s23 }
  0x52   : > { %p3492_p5 = pnand %p3490_p13, %p3985_p9  ;;  %p3498_p2 = scmp.lt.s32.totalorder %s3496_s16, %s3489_s30 }
  0x54   : > { %p3493_p10 = pneg %p3492_p5  ;;  %p3499_p1 = por %p3498_p2, %p3497_p12 }
  0x56   : > { %p3500_p3 = pnand %p3499_p1, %p3493_p10 }
  0x58   : > { %3503 = shalt.err (!%p3500_p3)
}
  0x59   : > { %s4629_s14 = scalar_lea.sflag [#allocation9], %s3930_s13  ;;  %s4630_s6 = sld [smem:[#allocation30_spill]] }
  0x5a   : > { %3337 = dma.hbm_to_vmem [thread:$0]  (!%p4627_p8), %s3975_s11, 2048, %s3978_s10, %s4629_s14, %s3793_s17, %s3793_s17, %s3794_s19  }
  0x5b   : > { %s426_s22 = scalar_lea.vmem [#allocation11], %s3966_s29  ;;  %s4604_s16 = scalar_lea.sflag [#allocation12], %s3930_s13 }
  0x5c   : > { %s433_s23 = sshll.u32 %s426_s22, 4  ;;  %s4020_s23 = int_to_ptr.vmem [resolvable:$true] %s433_s23 }
  0x5f   : > { %s4017_s30 = scalar_lea.hbm %s4630_s6, %s3969_s26  ;;  %s3509_s14 = scalar_lea.hbm %s4630_s6, 4096 }
  0x60   : > { %s3504_s1 = scalar_lea.hbm %s4017_s30, 2048  ;;  %p3510_p4 = scmp.lt.u32.totalorder %s4017_s30, %s4630_s6 }
  0x61   : > { %p3505_p12 = scmp.ne.s32.totalorder %s4017_s30, %s3504_s1  ;;  %p3511_p6 = scmp.lt.u32.totalorder %s3509_s14, %s3504_s1 }
  0x62   : > { %p3513_p11 = scmp.lt.u32.totalorder %s3504_s1, %s4017_s30 }
  0x63   : > { %p3507_p2 = pnand %p3505_p12, %p3985_p9  ;;  %p3512_p7 = por %p3511_p6, %p3510_p4 }
  0x65   : > { %p3508_p0 = pneg %p3507_p2  ;;  %p3514_p13 = por %p3513_p11, %p3512_p7 }
  0x67   : > { %p3515_p5 = pnand %p3514_p13, %p3508_p0 }
  0x69   : > { %3518 = shalt.err (!%p3515_p5)
}
  0x6a   : > { %s3519_s22 = scalar_lea.vmem %s4020_s23, 2048  ;;  %s3796_s10 = smov [#allocation11]  }
  0x6b   : > { %p3520_p10 = scmp.ne.s32.totalorder %s4020_s23, %s3519_s22  ;;  %s3524_s11 = sshll.u32 %s3796_s10, 4  ;;  %s3525_s11 = int_to_ptr.vmem [resolvable:$false] %s3524_s11 }
  0x6c   : > { %s3526_s24 = scalar_lea.vmem %s3525_s11, 4096  ;;  %p3527_p12 = scmp.lt.s32.totalorder %s4020_s23, %s3525_s11 }
  0x6d   : > { %p3522_p1 = pnand %p3520_p10, %p3985_p9  ;;  %p3528_p2 = scmp.lt.s32.totalorder %s3526_s24, %s3519_s22 }
  0x6f   : > { %p3523_p3 = pneg %p3522_p1  ;;  %p3529_p4 = por %p3528_p2, %p3527_p12 }
  0x71   : > { %p3530_p6 = pnand %p3529_p4, %p3523_p3 }
  0x73   : > { %3533 = shalt.err (!%p3530_p6)
}
  0x74   : > { %3343 = dma.hbm_to_vmem [thread:$0]  (!%p4627_p8), %s4017_s30, 2048, %s4020_s23, %s4604_s16, %s3793_s17, %s3793_s17, %s3794_s19  }
  0x75   : > { %s4631_s8 = sld [smem:[#allocation31_spill]]  ;;  %s468_s22 = scalar_lea.vmem [#allocation14], %s3966_s29 }
  0x76   : > { %s475_s10 = sshll.u32 %s468_s22, 4  ;;  %s3797_s11 = smov [#allocation2]   ;;  %s4056_s10 = int_to_ptr.vmem [resolvable:$true] %s475_s10 }
  0x77   : > { %s4058_s24 = sshll.u32 %s3797_s11, 4  ;;  %s4606_s4 = scalar_lea.sflag [#allocation15], %s3930_s13  ;;  %s338_s24 = int_to_ptr.vmem [resolvable:$true] %s4058_s24 }
  0x7b   : > { %s4053_s2 = scalar_lea.hbm %s4631_s8, %s3969_s26  ;;  %s3539_s1 = scalar_lea.hbm %s4631_s8, 4096 }
  0x7c   : > { %s3534_s6 = scalar_lea.hbm %s4053_s2, 2048  ;;  %p3540_p13 = scmp.lt.u32.totalorder %s4053_s2, %s4631_s8 }
  0x7d   : > { %p3535_p0 = scmp.ne.s32.totalorder %s4053_s2, %s3534_s6  ;;  %p3541_p5 = scmp.lt.u32.totalorder %s3539_s1, %s3534_s6 }
  0x7e   : > { %p3543_p1 = scmp.lt.u32.totalorder %s3534_s6, %s4053_s2 }
  0x7f   : > { %p3537_p7 = pnand %p3535_p0, %p3985_p9  ;;  %p3542_p10 = por %p3541_p5, %p3540_p13 }
  0x81   : > { %p3538_p11 = pneg %p3537_p7  ;;  %p3544_p3 = por %p3543_p1, %p3542_p10 }
  0x83   : > { %p3545_p12 = pnand %p3544_p3, %p3538_p11 }
  0x85   : > { %3548 = shalt.err (!%p3545_p12)
}
  0x86   : > { %s3549_s22 = scalar_lea.vmem %s4056_s10, 2048  ;;  %s3798_s11 = smov [#allocation14]  }
  0x87   : > { %p3550_p2 = scmp.ne.s32.totalorder %s4056_s10, %s3549_s22  ;;  %s3554_s30 = sshll.u32 %s3798_s11, 4  ;;  %s3555_s30 = int_to_ptr.vmem [resolvable:$false] %s3554_s30 }
  0x88   : > { %s3556_s16 = scalar_lea.vmem %s3555_s30, 4096  ;;  %p3557_p0 = scmp.lt.s32.totalorder %s4056_s10, %s3555_s30 }
  0x89   : > { %p3552_p4 = pnand %p3550_p2, %p3985_p9  ;;  %p3558_p7 = scmp.lt.s32.totalorder %s3556_s16, %s3549_s22 }
  0x8b   : > { %p3553_p6 = pneg %p3552_p4  ;;  %p3559_p13 = por %p3558_p7, %p3557_p0 }
  0x8d   : > { %p3560_p5 = pnand %p3559_p13, %p3553_p6 }
  0x8f   : > { %3563 = shalt.err (!%p3560_p5)
}
  0x90   : > { %3349 = dma.hbm_to_vmem [thread:$0]  (!%p4627_p8), %s4053_s2, 2048, %s4056_s10, %s4606_s4, %s3793_s17, %s3793_s17, %s3794_s19  }
  0x91   : > { %s3564_s1 = scalar_lea.hbm %s4580_s0, 256  ;;  %p4632_p10 = scmp.ne.s32.totalorder %s4625_s25, 0 }
  0x92   : > { %p3565_p11 = scmp.ne.s32.totalorder %s4580_s0, %s3564_s1  ;;  %p3571_p12 = scmp.lt.u32.totalorder %s3564_s1, %s4580_s0 }
  0x94   : > { %p3567_p1 = pnand %p3565_p11, %p4632_p10 }
  0x96   : > { %p3568_p3 = pneg %p3567_p1 }
  0x98   : > { %p3573_p2 = pnand %p3571_p12, %p3568_p3 }
  0x9a   : > { %3576 = shalt.err (!%p3573_p2)
}
  0x9b   : > { %s3577_s16 = scalar_lea.vmem %s338_s24, 256  ;;  %p3585_p7 = scmp.lt.s32.totalorder %s338_s24, %s338_s24 }
  0x9c   : > { %p3578_p4 = scmp.ne.s32.totalorder %s338_s24, %s3577_s16  ;;  %p3586_p13 = scmp.lt.s32.totalorder %s3577_s16, %s3577_s16 }
  0x9e   : > { %p3580_p6 = pnand %p3578_p4, %p4632_p10  ;;  %p3587_p5 = por %p3586_p13, %p3585_p7 }
  0xa0   : > { %p3581_p0 = pneg %p3580_p6 }
  0xa2   : > { %p3588_p8 = pnand %p3587_p5, %p3581_p0 }
  0xa4   : > { %3591 = shalt.err (!%p3588_p8)
}
  0xa5   : > { %p4633_p11 = scmp.ne.s32.totalorder %s4622_s12, 0  ;;  %s3799_s6 = smov [#allocation7]  }
  0xa6   : > { %s366_s23 = sshll.u32 %s3799_s6, 4  ;;  %s4113_s22 = scalar_lea.hbm %s4585_s5, %s3969_s26  ;;  %s367_s23 = int_to_ptr.vmem [resolvable:$true] %s366_s23 }
  0xa7   : > { %3327 = dma.hbm_to_vmem [thread:$0]  (!%p4633_p11), %s4580_s0, 256, %s338_s24, [#allocation3], %s3793_s17, %s3793_s17, %s3794_s19  }
  0xa8   : > { %s3592_s16 = scalar_lea.hbm %s4583_s3, 256 }
  0xa9   : > { %p3593_p8 = scmp.ne.s32.totalorder %s4583_s3, %s3592_s16  ;;  %p3599_p12 = scmp.lt.u32.totalorder %s3592_s16, %s4583_s3 }
  0xab   : > { %p3595_p1 = pnand %p3593_p8, %p4632_p10 }
  0xad   : > { %p3596_p3 = pneg %p3595_p1 }
  0xaf   : > { %p3601_p2 = pnand %p3599_p12, %p3596_p3 }
  0xb1   : > { %3604 = shalt.err (!%p3601_p2)
}
  0xb2   : > { %s3605_s10 = scalar_lea.vmem %s367_s23, 256  ;;  %p3613_p7 = scmp.lt.s32.totalorder %s367_s23, %s367_s23 }
  0xb3   : > { %p3606_p4 = scmp.ne.s32.totalorder %s367_s23, %s3605_s10  ;;  %p3614_p13 = scmp.lt.s32.totalorder %s3605_s10, %s3605_s10 }
  0xb5   : > { %p3608_p6 = pnand %p3606_p4, %p4632_p10  ;;  %p3615_p5 = por %p3614_p13, %p3613_p7 }
  0xb7   : > { %p3609_p0 = pneg %p3608_p6 }
  0xb9   : > { %p3616_p9 = pnand %p3615_p5, %p3609_p0 }
  0xbb   : > { %3619 = shalt.err (!%p3616_p9)
}
  0xbc   : > { %3333 = dma.hbm_to_vmem [thread:$0]  (!%p4633_p11), %s4583_s3, 256, %s367_s23, [#allocation6], %s3793_s17, %s3793_s17, %s3794_s19  }
  0xbd   : > { %s405_s25 = scalar_lea.vmem [#allocation10], %s3966_s29  ;;  %s4143_s14 = scalar_lea.hbm %s4587_s7, %s3969_s26 }
  0xbe   : > { %s412_s6 = sshll.u32 %s405_s25, 4  ;;  %s3620_s11 = scalar_lea.hbm %s4113_s22, 2048  ;;  %s4137_s6 = int_to_ptr.vmem [resolvable:$true] %s412_s6 }
  0xbf   : > { %p3621_p9 = scmp.ne.s32.totalorder %s4113_s22, %s3620_s11  ;;  %p4634_p10 = scmp.ne.s32.totalorder %s4628_s20, 0 }
  0xc0   : > { %s3625_s24 = scalar_lea.hbm %s4585_s5, 4096  ;;  %p3626_p11 = scmp.lt.u32.totalorder %s4113_s22, %s4585_s5 }
  0xc1   : > { %p3623_p8 = pnand %p3621_p9, %p4634_p10  ;;  %p3627_p3 = scmp.lt.u32.totalorder %s3625_s24, %s3620_s11 }
  0xc2   : > { %p3629_p2 = scmp.lt.u32.totalorder %s3620_s11, %s4113_s22 }
  0xc3   : > { %p3624_p1 = pneg %p3623_p8  ;;  %p3628_p12 = por %p3627_p3, %p3626_p11 }
  0xc5   : > { %p3630_p4 = por %p3629_p2, %p3628_p12 }
  0xc7   : > { %p3631_p6 = pnand %p3630_p4, %p3624_p1 }
  0xc9   : > { %3634 = shalt.err (!%p3631_p6)
}
  0xca   : > { %s3635_s10 = scalar_lea.vmem %s4137_s6, 2048  ;;  %s3800_s4 = smov [#allocation10]  }
  0xcb   : > { %p3636_p0 = scmp.ne.s32.totalorder %s4137_s6, %s3635_s10  ;;  %s3640_s8 = sshll.u32 %s3800_s4, 4  ;;  %s3641_s8 = int_to_ptr.vmem [resolvable:$false] %s3640_s8 }
  0xcc   : > { %s3642_s25 = scalar_lea.vmem %s3641_s8, 4096  ;;  %p3643_p5 = scmp.lt.s32.totalorder %s4137_s6, %s3641_s8 }
  0xcd   : > { %p3638_p7 = pnand %p3636_p0, %p4634_p10  ;;  %p3644_p9 = scmp.lt.s32.totalorder %s3642_s25, %s3635_s10 }
  0xcf   : > { %p3639_p13 = pneg %p3638_p7  ;;  %p3645_p8 = por %p3644_p9, %p3643_p5 }
  0xd1   : > { %p3646_p11 = pnand %p3645_p8, %p3639_p13 }
  0xd3   : > { %3649 = shalt.err (!%p3646_p11)
}
  0xd4   : > { %p4635_p1 = scmp.ne.s32.totalorder %s4623_s15, 0  ;;  %s4636_s1 = scalar_lea.sflag [#allocation9], %s3930_s13 }
  0xd5   : > { %s447_s12 = scalar_lea.vmem [#allocation13], %s3966_s29  ;;  %s4178_s24 = scalar_lea.hbm %s4589_s9, %s3969_s26 }
  0xd6   : > { %3340 = dma.hbm_to_vmem [thread:$0]  (!%p4635_p1), %s4113_s22, 2048, %s4137_s6, %s4636_s1, %s3793_s17, %s3793_s17, %s3794_s19  }
  0xd7   : > { %s454_s11 = sshll.u32 %s447_s12, 4  ;;  %s3650_s2 = scalar_lea.hbm %s4143_s14, 2048  ;;  %s4172_s11 = int_to_ptr.vmem [resolvable:$true] %s454_s11 }
  0xd8   : > { %p3651_p3 = scmp.ne.s32.totalorder %s4143_s14, %s3650_s2  ;;  %s3655_s4 = scalar_lea.hbm %s4587_s7, 4096 }
  0xd9   : > { %p3656_p4 = scmp.lt.u32.totalorder %s4143_s14, %s4587_s7  ;;  %p3657_p6 = scmp.lt.u32.totalorder %s3655_s4, %s3650_s2 }
  0xda   : > { %p3653_p12 = pnand %p3651_p3, %p4634_p10  ;;  %p3659_p7 = scmp.lt.u32.totalorder %s3650_s2, %s4143_s14 }
  0xdb   : > { %p3658_p0 = por %p3657_p6, %p3656_p4 }
  0xdc   : > { %p3654_p2 = pneg %p3653_p12 }
  0xdd   : > { %p3660_p13 = por %p3659_p7, %p3658_p0 }
  0xdf   : > { %p3661_p5 = pnand %p3660_p13, %p3654_p2 }
  0xe1   : > { %3664 = shalt.err (!%p3661_p5)
}
  0xe2   : > { %s3665_s26 = scalar_lea.vmem %s4172_s11, 2048  ;;  %s3801_s6 = smov [#allocation13]  }
  0xe3   : > { %p3666_p9 = scmp.ne.s32.totalorder %s4172_s11, %s3665_s26  ;;  %s3670_s25 = sshll.u32 %s3801_s6, 4  ;;  %s3671_s25 = int_to_ptr.vmem [resolvable:$false] %s3670_s25 }
  0xe4   : > { %s3672_s1 = scalar_lea.vmem %s3671_s25, 4096  ;;  %p3673_p3 = scmp.lt.s32.totalorder %s4172_s11, %s3671_s25 }
  0xe5   : > { %p3668_p8 = pnand %p3666_p9, %p4634_p10  ;;  %p3674_p12 = scmp.lt.s32.totalorder %s3672_s1, %s3665_s26 }
  0xe7   : > { %p3669_p11 = pneg %p3668_p8  ;;  %p3675_p4 = por %p3674_p12, %p3673_p3 }
  0xe9   : > { %p3676_p6 = pnand %p3675_p4, %p3669_p11 }
  0xeb   : > { %3679 = shalt.err (!%p3676_p6)
}
  0xec   : > { %s4637_s12 = scalar_lea.sflag [#allocation12], %s3930_s13  ;;  %s489_s30 = scalar_lea.vmem [#allocation16], %s3966_s29 }
  0xed   : > { %3346 = dma.hbm_to_vmem [thread:$0]  (!%p4635_p1), %s4143_s14, 2048, %s4172_s11, %s4637_s12, %s3793_s17, %s3793_s17, %s3794_s19  }
  0xee   : > { %s496_s16 = sshll.u32 %s489_s30, 4  ;;  %s3680_s2 = scalar_lea.hbm %s4178_s24, 2048  ;;  %s4207_s16 = int_to_ptr.vmem [resolvable:$true] %s496_s16 }
  0xef   : > { %p3681_p2 = scmp.ne.s32.totalorder %s4178_s24, %s3680_s2  ;;  %s3685_s4 = scalar_lea.hbm %s4589_s9, 4096 }
  0xf0   : > { %p3686_p13 = scmp.lt.u32.totalorder %s4178_s24, %s4589_s9  ;;  %p3687_p5 = scmp.lt.u32.totalorder %s3685_s4, %s3680_s2 }
  0xf1   : > { %p3683_p0 = pnand %p3681_p2, %p4634_p10  ;;  %p3689_p8 = scmp.lt.u32.totalorder %s3680_s2, %s4178_s24 }
  0xf2   : > { %p3688_p9 = por %p3687_p5, %p3686_p13 }
  0xf3   : > { %p3684_p7 = pneg %p3683_p0 }
  0xf4   : > { %p3690_p11 = por %p3689_p8, %p3688_p9 }
  0xf6   : > { %p3691_p3 = pnand %p3690_p11, %p3684_p7 }
  0xf8   : > { %3694 = shalt.err (!%p3691_p3)
}
  0xf9   : > { %s3695_s29 = scalar_lea.vmem %s4207_s16, 2048  ;;  %s3802_s14 = smov [#allocation16]  }
  0xfa   : > { %p3696_p12 = scmp.ne.s32.totalorder %s4207_s16, %s3695_s29  ;;  %s3700_s11 = sshll.u32 %s3802_s14, 4  ;;  %s3701_s11 = int_to_ptr.vmem [resolvable:$false] %s3700_s11 }
  0xfb   : > { %s3702_s26 = scalar_lea.vmem %s3701_s11, 4096  ;;  %p3703_p2 = scmp.lt.s32.totalorder %s4207_s16, %s3701_s11 }
  0xfc   : > { %p3698_p4 = pnand %p3696_p12, %p4634_p10  ;;  %p3704_p0 = scmp.lt.s32.totalorder %s3702_s26, %s3695_s29 }
  0xfe   : > { %p3699_p6 = pneg %p3698_p4  ;;  %p3705_p13 = por %p3704_p0, %p3703_p2 }
 0x100   : > { %p3706_p5 = pnand %p3705_p13, %p3699_p6 }
 0x102   : > { %3709 = shalt.err (!%p3706_p5)
}
 0x103   : > { %s4638_s6 = scalar_lea.sflag [#allocation15], %s3930_s13  ;;  %p4639_p10 = scmp.ne.s32.totalorder %s4621_s28, 0 }
 0x104   : > { %3352 = dma.hbm_to_vmem [thread:$0]  (!%p4635_p1), %s4178_s24, 2048, %s4207_s16, %s4638_s6, %s3793_s17, %s3793_s17, %s3794_s19  }
 0x105   : > { %515 = sbr.rel (%p4639_p10) target bundleno = 3931 (0xf5b), region = 64  ;;  %p4640_p7 = scmp.eq.s32.totalorder (!%p4639_p10), %s3887_s21, 0 }
 0x10c   : > { %3753 = dma.done.wait (%p4640_p7), [#allocation3], 256   ;;  %p4641_p9 = pmov %p4640_p7 }
 0x10d   : > { %p4642_p8 = pmov %p4640_p7 }
 0x10e   : > { %3755 = vsyncadd (%p4641_p9), [#allocation3], 4294967040 }
 0x10f   : > { %3757 = dma.done.wait (%p4642_p8), [#allocation6], 2304   ;;  %p4643_p11 = pmov %p4640_p7 }
 0x110   : > { %s529_s13 = sand.u32 1, %s3887_s21   ;;  %s531_s15 = sand.u32 1, %s3782_s18  }
 0x111   : > { %3759 = vsyncadd (%p4643_p11), [#allocation6], 4294964992  ;;  %s2540_s17 = sshll.u32 %s531_s15, 7  ;;  %s530_s28 = scalar_lea.sflag [#allocation9], %s529_s13 }
 0x112   : > { %s4247_s19 = scalar_lea.vmem [#allocation8], %s2540_s17  ;;  %p4644_p1 = scmp.ne.s32.totalorder %s4620_s27, 0 }
 0x114   : > { %3761 = dma.done.wait (%p4644_p1), %s530_s28, 4096  }
 0x115   : > { %3763 = vsyncadd (%p4644_p1), %s530_s28, 4294963200  ;;  %s4253_s20 = scalar_lea.vmem [#allocation10], %s2540_s17  ;;  %s548_s24 = scalar_lea.sflag [#allocation12], %s529_s13 }
 0x116   : > { %s4255_s25 = scalar_lea.vmem [#allocation11], %s2540_s17 }
 0x117   : > { %3765 = dma.done.wait (%p4644_p1), %s548_s24, 4096  }
 0x118   : > { %3767 = vsyncadd (%p4644_p1), %s548_s24, 4294963200  ;;  %s4261_s1 = scalar_lea.vmem [#allocation13], %s2540_s17  ;;  %s566_s12 = scalar_lea.sflag [#allocation15], %s529_s13 }
 0x119   : > { %s4263_s30 = scalar_lea.vmem [#allocation14], %s2540_s17 }
 0x11a   : > { %3769 = dma.done.wait (%p4644_p1), %s566_s12, 4096  }
 0x11b   : > { %3771 = vsyncadd (%p4644_p1), %s566_s12, 4294963200  ;;  %p641_p3 = scmp.lt.s32.totalorder %s3887_s21, 1  ;;  %v645_v0 = vlaneseq  ;;  %s4645_s4 = sld [smem:[#allocation32_spill]]  ;;  %v3803_v2 = vmov 0.0  }
 0x11c   : > { %s4289_s27 = scalar_lea.vmem [#allocation16], %s2540_s17  ;;  %p4646_p12 = scmp.ne.s32.totalorder %s3887_s21, 0 }
 0x11d   : > { %s642_s16 = scalar_select %p641_p3, %s3887_s21, 1  ;;  %v4272_v1 = vand.u32 127, %v645_v0 }
 0x11e   : > { %656 = sbr.rel (%p4646_p12) target bundleno = 537 (0x219), region = 104  ;;  %v659_v5 = vld [vmem:[#allocation5] sm:$0xff] (!%p4646_p12)  ;;  %v660_v6 = vld [vmem:[#allocation5 + $0x8] sm:$0xff] (!%p4646_p12)  ;;  %v661_v7 = vld [vmem:[#allocation5 + $0x10] sm:$0xff] (!%p4646_p12)  ;;  %s4647_s14 = sld [smem:[#allocation28_spill]] (!%p4646_p12) }
 0x11f   : > { %s2546_s2 = sshll.u32 %s642_s16, 3  ;;  %vm647_vm0 = vcmp.lt.s32.totalorder %v4272_v1, 32  ;;  %vm650_vm1 = vcmp.eq.s32.totalorder %v4272_v1, 32  ;;  %v3040_v8 = vpack.c.bf16 (!%p4646_p12), %v660_v6, %v659_v5  ;;  %v662_v9 = vld [vmem:[#allocation5 + $0x18] sm:$0xff] (!%p4646_p12)  ;;  %v663_v11 = vld [vmem:[#allocation5 + $0x20] sm:$0xff] (!%p4646_p12)  ;;  %v664_v12 = vld [vmem:[#allocation5 + $0x28] sm:$0xff] (!%p4646_p12) }
 0x120   : > { %v4284_v3 = vsel %vm647_vm0, 1.0, %v3803_v2  ;;  %v4287_v4 = vsel %vm650_vm1, 1.0, %v3803_v2  ;;  %v3044_v10 = vpack.c.bf16 (!%p4646_p12), %v662_v9, %v661_v7  ;;  %v3048_v13 = vpack.c.bf16 (!%p4646_p12), %v664_v12, %v663_v11  ;;  %v657_v14 = vld [vmem:[#allocation2] sm:$0xff] (!%p4646_p12)  ;;  %v666_v16 = vld [vmem:[#allocation5 + $0x38] sm:$0xff] (!%p4646_p12)  ;;  %v667_v18 = vld [vmem:[#allocation5 + $0x40] sm:$0xff] (!%p4646_p12) }
 0x121   : > { %s4279_s8 = scalar_lea.vmem %s4645_s4, %s2546_s2  ;;  %3041 = vmatprep.subr.bf16.mxu0 (!%p4646_p12), %v3040_v8  ;;  %v665_v15 = vld [vmem:[#allocation5 + $0x30] sm:$0xff] (!%p4646_p12)  ;;  %2771 = vmatprep.mubr.f32.mxu0 (!%p4646_p12), %v657_v14  ;;  %v668_v19 = vld [vmem:[#allocation5 + $0x48] sm:$0xff] (!%p4646_p12)  ;;  %v670_v22 = vld [vmem:[#allocation5 + $0x58] sm:$0xff] (!%p4646_p12) }
 0x122   : > { %3043 = vmatpush3.bf16.msra.mxu0 (!%p4646_p12), %v3040_v8  ;;  %v3052_v17 = vpack.c.bf16 (!%p4646_p12), %v666_v16, %v665_v15  ;;  %v3056_v20 = vpack.c.bf16 (!%p4646_p12), %v668_v19, %v667_v18  ;;  %v669_v21 = vld [vmem:[#allocation5 + $0x50] sm:$0xff] (!%p4646_p12)  ;;  %v671_v24 = vld [vmem:[#allocation5 + $0x60] sm:$0xff] (!%p4646_p12)  ;;  %v672_v25 = vld [vmem:[#allocation5 + $0x68] sm:$0xff] (!%p4646_p12) }
 0x123   : > { %3045 = vmatprep.subr.bf16.mxu0 (!%p4646_p12), %v3044_v10  ;;  %v3060_v23 = vpack.c.bf16 (!%p4646_p12), %v670_v22, %v669_v21  ;;  %v3064_v26 = vpack.c.bf16 (!%p4646_p12), %v672_v25, %v671_v24  ;;  %v673_v27 = vld [vmem:[#allocation5 + $0x70] sm:$0xff] (!%p4646_p12)  ;;  %v674_v28 = vld [vmem:[#allocation5 + $0x78] sm:$0xff] (!%p4646_p12) }
 0x124   : > { %v3068_v29 = vpack.c.bf16 (!%p4646_p12), %v674_v28, %v673_v27  ;;  %v658_v30 = vld [vmem:[#allocation2 + $0x8] sm:$0xff] (!%p4646_p12)  ;;  %v2550_v31 = vld [vmem:[%s4647_s14] ss:$0 sm:$0xff] (!%p4646_p12) }
 0x126   : > { %3047 = vmatpush3.bf16.msra.mxu0 %v3044_v10 }
 0x127   : > { %3049 = vmatprep.subr.bf16.mxu0 %v3048_v13 }
 0x12a   : > { %3051 = vmatpush3.bf16.msra.mxu0 %v3048_v13 }
 0x12b   : > { %3053 = vmatprep.subr.bf16.mxu0 %v3052_v17 }
 0x12e   : > { %3055 = vmatpush3.bf16.msra.mxu0 %v3052_v17 }
 0x12f   : > { %3057 = vmatprep.subr.bf16.mxu0 %v3056_v20 }
 0x132   : > { %3059 = vmatpush3.bf16.msra.mxu0 %v3056_v20 }
 0x133   : > { %3061 = vmatprep.subr.bf16.mxu0 %v3060_v23 }
 0x136   : > { %3063 = vmatpush3.bf16.msra.mxu0 %v3060_v23 }
 0x137   : > { %3065 = vmatprep.subr.bf16.mxu0 %v3064_v26 }
 0x13a   : > { %3067 = vmatpush3.bf16.msra.mxu0 %v3064_v26 }
 0x13b   : > { %3069 = vmatprep.subr.bf16.mxu0 %v3068_v29 }
 0x13e   : > { %3071 = vmatpush3.bf16.msra.mxu0 %v3068_v29 }
 0x141   : > { %2772 = vmatmul.mubr.f32.vlgmr.msra.gmra.mrb[0].mxu0 %v658_v30 }
 0x214   : > { %v2773_v32 = vpop.f32.mrb[0].mxu0 }
 0x215   : > { %v754_v33 = vadd.f32 %v2773_v32, %v2550_v31  ;;  %v748_v34 = vpop.f32.mrb[1].mxu0 }
 0x216   : > { %v749_v35 = vadd.f32 %v2550_v31, %v748_v34 }
 0x217   : > { %758 = vst [vmem:[#allocation17 + $0x8] sm:$0xff] %v754_v33 }
 0x218   : > { %757 = vst [vmem:[#allocation17] sm:$0xff] %v749_v35 }
 0x219 PF: > { %v764_v36 = vld [vmem:[%s4247_s19] sm:$0xff]  ;;  %v765_v37 = vld [vmem:[%s4247_s19 + $0x8] sm:$0xff]  ;;  %v766_v38 = vld [vmem:[%s4247_s19 + $0x10] sm:$0xff]  ;;  %vm1038_vm2 = vcmp.lt.s32.totalorder %v4272_v1, 8  ;;  %vm1263_vm3 = vcmp.ge.s32.totalorder %v4272_v1, 8  ;;  %vm1264_vm4 = vcmp.lt.s32.totalorder %v4272_v1, 16 }
 0x21a   : > { %v3072_v39 = vpack.c.bf16 %v765_v37, %v764_v36  ;;  %v767_v40 = vld [vmem:[%s4247_s19 + $0x18] sm:$0xff]  ;;  %v855_v41 = vld [vmem:[%s4253_s20] sm:$0xff]  ;;  %v856_v42 = vld [vmem:[%s4253_s20 + $0x8] sm:$0xff]  ;;  %vm1161_vm6 = vcmask 130048   ;;  %vm1488_vm7 = vcmp.ge.s32.totalorder %v4272_v1, 16  ;;  %vm1489_vm8 = vcmp.lt.s32.totalorder %v4272_v1, 24 }
 0x21b   : > { %v3076_v43 = vpack.c.bf16 %v767_v40, %v766_v38  ;;  %v3104_v44 = vpack.c.bf16 %v856_v42, %v855_v41  ;;  %v768_v45 = vld [vmem:[%s4247_s19 + $0x20] sm:$0xff]  ;;  %v769_v46 = vld [vmem:[%s4247_s19 + $0x28] sm:$0xff]  ;;  %v857_v47 = vld [vmem:[%s4253_s20 + $0x10] sm:$0xff]  ;;  %vm1713_vm10 = vcmp.ge.s32.totalorder %v4272_v1, 24  ;;  %s3805_s11 = smov [#allocation17]   ;;  %p3360_p4 = scmp.eq.s32.totalorder %s3887_s21, 1 }
 0x21c   : > { %3073 = vmatprep.subr.bf16.mxu0 %v3072_v39  ;;  %v858_v48 = vld [vmem:[%s4253_s20 + $0x18] sm:$0xff]  ;;  %v859_v50 = vld [vmem:[%s4253_s20 + $0x20] sm:$0xff]  ;;  %v860_v51 = vld [vmem:[%s4253_s20 + $0x28] sm:$0xff]  ;;  %v3080_v52 = vpack.c.bf16 %v769_v46, %v768_v45  ;;  %s2310_s26 = sshll.u32 %s3805_s11, 4  ;;  %s2311_s26 = int_to_ptr.vmem [resolvable:$true] %s2310_s26 }
 0x21d   : > { %3075 = vmatpush3.bf16.msra.mxu0 %v3072_v39  ;;  %3105 = vmatprep.subr.bf16.mxu1 %v3104_v44  ;;  %v3108_v49 = vpack.c.bf16 %v858_v48, %v857_v47  ;;  %v770_v53 = vld [vmem:[%s4247_s19 + $0x30] sm:$0xff]  ;;  %v771_v54 = vld [vmem:[%s4247_s19 + $0x38] sm:$0xff]  ;;  %v3112_v55 = vpack.c.bf16 %v860_v51, %v859_v50  ;;  %v772_v59 = vld [vmem:[%s4247_s19 + $0x40] sm:$0xff]  ;;  %s3710_s6 = scalar_lea.vmem %s2311_s26, 256  ;;  %p3717_p13 = scmp.lt.s32.totalorder %s2311_s26, %s2311_s26 }
 0x21e   : > { %3077 = vmatprep.subr.bf16.mxu0 %v3076_v43  ;;  %3107 = vmatpush3.bf16.msra.mxu1 %v3104_v44  ;;  %v861_v56 = vld [vmem:[%s4253_s20 + $0x30] sm:$0xff]  ;;  %v862_v57 = vld [vmem:[%s4253_s20 + $0x38] sm:$0xff]  ;;  %v3084_v58 = vpack.c.bf16 %v771_v54, %v770_v53  ;;  %v773_v60 = vld [vmem:[%s4247_s19 + $0x48] sm:$0xff]  ;;  %p3711_p6 = scmp.ne.s32.totalorder %s2311_s26, %s3710_s6  ;;  %p3718_p5 = scmp.lt.s32.totalorder %s3710_s6, %s3710_s6 }
 0x21f   : > { %3109 = vmatprep.subr.bf16.mxu1 %v3108_v49  ;;  %v3116_v61 = vpack.c.bf16 %v862_v57, %v861_v56  ;;  %v4314_v62 = vld [vmem:[#allocation17] sm:$0xff]  ;;  %v864_v5 = vld [vmem:[%s4253_s20 + $0x48] sm:$0xff]  ;;  %v3088_v6 = vpack.c.bf16 %v773_v60, %v772_v59  ;;  %v774_v7 = vld [vmem:[%s4247_s19 + $0x50] sm:$0xff] }
 0x220   : > { %v863_v63 = vld [vmem:[%s4253_s20 + $0x40] sm:$0xff]  ;;  %2806 = vmatprep.mubr.f32.mxu0 %v4314_v62  ;;  %2841 = vmatprep.mubr.f32.mxu1 %v4314_v62  ;;  %v775_v8 = vld [vmem:[%s4247_s19 + $0x58] sm:$0xff]  ;;  %v865_v10 = vld [vmem:[%s4253_s20 + $0x50] sm:$0xff]  ;;  %p3712_p2 = pnand %p3711_p6, %p3360_p4  ;;  %p3719_p10 = por %p3718_p5, %p3717_p13 }
 0x221   : > { %3079 = vmatpush3.bf16.msra.mxu0 %v3076_v43  ;;  %v3120_v9 = vpack.c.bf16 %v864_v5, %v863_v63  ;;  %v866_v11 = vld [vmem:[%s4253_s20 + $0x58] sm:$0xff]  ;;  %v3092_v12 = vpack.c.bf16 %v775_v8, %v774_v7  ;;  %v776_v13 = vld [vmem:[%s4247_s19 + $0x60] sm:$0xff]  ;;  %v777_v14 = vld [vmem:[%s4247_s19 + $0x68] sm:$0xff] }
 0x222   : > { %3081 = vmatprep.subr.bf16.mxu0 %v3080_v52  ;;  %3111 = vmatpush3.bf16.msra.mxu1 %v3108_v49  ;;  %v3124_v15 = vpack.c.bf16 %v866_v11, %v865_v10  ;;  %v867_v16 = vld [vmem:[%s4253_s20 + $0x60] sm:$0xff]  ;;  %v868_v17 = vld [vmem:[%s4253_s20 + $0x68] sm:$0xff]  ;;  %v3096_v18 = vpack.c.bf16 %v777_v14, %v776_v13  ;;  %v778_v19 = vld [vmem:[%s4247_s19 + $0x70] sm:$0xff]  ;;  %p3713_p0 = pneg %p3712_p2 }
 0x223   : > { %3113 = vmatprep.subr.bf16.mxu1 %v3112_v55  ;;  %v779_v20 = vld [vmem:[%s4247_s19 + $0x78] sm:$0xff]  ;;  %v3128_v21 = vpack.c.bf16 %v868_v17, %v867_v16  ;;  %v869_v22 = vld [vmem:[%s4253_s20 + $0x70] sm:$0xff]  ;;  %v946_v25 = vld [vmem:[%s4255_s25] sm:$0xff] }
 0x224   : > { %v870_v23 = vld [vmem:[%s4253_s20 + $0x78] sm:$0xff]  ;;  %v3100_v24 = vpack.c.bf16 %v779_v20, %v778_v19  ;;  %v947_v26 = vld [vmem:[%s4255_s25 + $0x8] sm:$0xff]  ;;  %v948_v29 = vld [vmem:[%s4255_s25 + $0x10] sm:$0xff]  ;;  %p3720_p7 = pnand %p3719_p10, %p3713_p0 }
 0x225   : > { %3083 = vmatpush3.bf16.msra.mxu0 %v3080_v52  ;;  %v3132_v27 = vpack.c.bf16 %v870_v23, %v869_v22  ;;  %v3136_v28 = vpack.c.bf16 %v947_v26, %v946_v25  ;;  %v949_v30 = vld [vmem:[%s4255_s25 + $0x18] sm:$0xff]  ;;  %v4336_v31 = vld [vmem:[#allocation17 + $0x8] sm:$0xff]  ;;  %v950_v33 = vld [vmem:[%s4255_s25 + $0x20] sm:$0xff]  ;;  %v4356_v52 = vsel %vm1038_vm2, 1.0, %v3803_v2 }
 0x226   : > { %3085 = vmatprep.subr.bf16.mxu0 %v3084_v58  ;;  %3115 = vmatpush3.bf16.msra.mxu1 %v3112_v55  ;;  %v3140_v32 = vpack.c.bf16 %v949_v30, %v948_v29  ;;  %v951_v34 = vld [vmem:[%s4255_s25 + $0x28] sm:$0xff]  ;;  %v952_v36 = vld [vmem:[%s4255_s25 + $0x30] sm:$0xff]  ;;  %v953_v37 = vld [vmem:[%s4255_s25 + $0x38] sm:$0xff] }
 0x227   : > { %3117 = vmatprep.subr.bf16.mxu1 %v3116_v61  ;;  %v3144_v35 = vpack.c.bf16 %v951_v34, %v950_v33  ;;  %v3148_v38 = vpack.c.bf16 %v953_v37, %v952_v36  ;;  %v954_v39 = vld [vmem:[%s4255_s25 + $0x40] sm:$0xff]  ;;  %v955_v40 = vld [vmem:[%s4255_s25 + $0x48] sm:$0xff]  ;;  %v956_v42 = vld [vmem:[%s4255_s25 + $0x50] sm:$0xff] }
 0x228   : > { %v3152_v41 = vpack.c.bf16 %v955_v40, %v954_v39  ;;  %v957_v43 = vld [vmem:[%s4255_s25 + $0x58] sm:$0xff]  ;;  %v958_v45 = vld [vmem:[%s4255_s25 + $0x60] sm:$0xff]  ;;  %v959_v46 = vld [vmem:[%s4255_s25 + $0x68] sm:$0xff] }
 0x229   : > { %3087 = vmatpush3.bf16.msra.mxu0 %v3084_v58  ;;  %v3156_v44 = vpack.c.bf16 %v957_v43, %v956_v42  ;;  %v3160_v47 = vpack.c.bf16 %v959_v46, %v958_v45  ;;  %v960_v48 = vld [vmem:[%s4255_s25 + $0x70] sm:$0xff]  ;;  %v961_v49 = vld [vmem:[%s4255_s25 + $0x78] sm:$0xff]  ;;  %vm1265_vm5 = vmand %vm1263_vm3, %vm1264_vm4 }
 0x22a   : > { %3089 = vmatprep.subr.bf16.mxu0 %v3088_v6  ;;  %3119 = vmatpush3.bf16.msra.mxu1 %v3116_v61  ;;  %v3164_v50 = vpack.c.bf16 %v961_v49, %v960_v48  ;;  %vm1490_vm9 = vmand %vm1488_vm7, %vm1489_vm8 }
 0x22b   : > { %3121 = vmatprep.subr.bf16.mxu1 %v3120_v9  ;;  %v4407_v36 = vsel %vm1490_vm9, 1.0, %v3803_v2  ;;  %vm1714_vm11 = vmand %vm1713_vm10, %vm647_vm0 }
 0x22d   : > { %3091 = vmatpush3.bf16.msra.mxu0 %v3088_v6 }
 0x22e   : > { %3093 = vmatprep.subr.bf16.mxu0 %v3092_v12  ;;  %3123 = vmatpush3.bf16.msra.mxu1 %v3120_v9 }
 0x22f   : > { %3125 = vmatprep.subr.bf16.mxu1 %v3124_v15 }
 0x231   : > { %3095 = vmatpush3.bf16.msra.mxu0 %v3092_v12  ;;  %v4377_v12 = vld [vmem:[#allocation7] sm:$0xff] }
 0x232   : > { %3097 = vmatprep.subr.bf16.mxu0 %v3096_v18  ;;  %3127 = vmatpush3.bf16.msra.mxu1 %v3124_v15  ;;  %v4380_v15 = vld [vmem:[#allocation7 + $0x8] sm:$0xff] }
 0x233   : > { %3129 = vmatprep.subr.bf16.mxu1 %v3128_v21 }
 0x235   : > { %3099 = vmatpush3.bf16.msra.mxu0 %v3096_v18  ;;  %v4386_v18 = vsel %vm1265_vm5, 1.0, %v3803_v2 }
 0x236   : > { %3101 = vmatprep.subr.bf16.mxu0 %v3100_v24  ;;  %3131 = vmatpush3.bf16.msra.mxu1 %v3128_v21 }
 0x237   : > { %3133 = vmatprep.subr.bf16.mxu1 %v3132_v27 }
 0x239   : > { %3103 = vmatpush3.bf16.msra.mxu0 %v3100_v24 }
 0x23a   : > { %3137 = vmatprep.subr.bf16.mxu0 %v3136_v28  ;;  %3135 = vmatpush3.bf16.msra.mxu1 %v3132_v27 }
 0x23c   : > { %2807 = vmatmul.mubr.f32.vlgmr.msra.gmra.mrb[0].mxu0 %v4336_v31 }
 0x23d   : > { %3139 = vmatpush3.bf16.msra.mxu0 %v3136_v28  ;;  %2842 = vmatmul.mubr.f32.vlgmr.msra.gmra.mrb[0].mxu1 %v4336_v31 }
 0x23e   : > { %3141 = vmatprep.subr.bf16.mxu0 %v3140_v32  ;;  %2876 = vmatprep.mubr.f32.mxu0 %v4314_v62 }
 0x241   : > { %3143 = vmatpush3.bf16.msra.mxu0 %v3140_v32 }
 0x242   : > { %3145 = vmatprep.subr.bf16.mxu0 %v3144_v35 }
 0x245   : > { %3147 = vmatpush3.bf16.msra.mxu0 %v3144_v35 }
 0x246   : > { %3149 = vmatprep.subr.bf16.mxu0 %v3148_v38 }
 0x249   : > { %3151 = vmatpush3.bf16.msra.mxu0 %v3148_v38 }
 0x24a   : > { %3153 = vmatprep.subr.bf16.mxu0 %v3152_v41 }
 0x24d   : > { %3155 = vmatpush3.bf16.msra.mxu0 %v3152_v41 }
 0x24e   : > { %3157 = vmatprep.subr.bf16.mxu0 %v3156_v44 }
 0x251   : > { %3159 = vmatpush3.bf16.msra.mxu0 %v3156_v44 }
 0x252   : > { %3161 = vmatprep.subr.bf16.mxu0 %v3160_v47 }
 0x255   : > { %3163 = vmatpush3.bf16.msra.mxu0 %v3160_v47 }
 0x256   : > { %3165 = vmatprep.subr.bf16.mxu0 %v3164_v50 }
 0x259   : > { %3167 = vmatpush3.bf16.msra.mxu0 %v3164_v50 }
 0x25c   : > { %2877 = vmatmul.mubr.f32.vlgmr.msra.gmra.mrb[2].mxu0 %v4336_v31 }
 0x30f   : > { %v2808_v51 = vpop.f32.mrb[0].mxu0 }
 0x310   : > { %v846_v53 = vpop.f32.mrb[1].mxu0  ;;  %v4358_v54 = vpop.f32.mrb[0].mxu1 }
 0x311   : > { %v4360_v55 = vpack.c.bf16 %v2808_v51, %v846_v53  ;;  %v4362_v56 = vpop.f32.mrb[1].mxu1  ;;  %v1043_v58 = vmul.f32 %v4358_v54, %v4356_v52  ;;  %v1269_v21 = vmul.f32 %v4358_v54, %v4386_v18  ;;  %v1494_v39 = vmul.f32 %v4358_v54, %v4407_v36 }
 0x312   : > { %v1042_v57 = vmul.f32 %v4356_v52, %v4362_v56  ;;  %v1268_v20 = vmul.f32 %v4386_v18, %v4362_v56  ;;  %v1493_v38 = vmul.f32 %v4407_v36, %v4362_v56 }
 0x313   : > { %3169 = vmatprep.subr.bf16.mxu1 %v4360_v55 }
 0x314   : > { %3171 = vmatpush3.bf16.xpose.msra.mxu1 %v4360_v55  ;;  %2883 = vmatprep.mubr.f32.mxu1 %v1042_v57 }
 0x31b   : > { %2884 = vmatmul.mubr.f32.vlgmr.msra.gmra.mrb[2].mxu1 %v1043_v58  ;;  %v3804_v58 = vmov 32  }
 0x32f   : > { %v2878_v59 = vpop.f32.mrb[2].mxu0 }
 0x330   : > { %v1034_v60 = vadd.f32 %v2878_v59, %v4287_v4  ;;  %v1028_v61 = vpop.f32.mrb[3].mxu0 }
 0x331   : > { %v1029_v63 = vadd.f32 %v4287_v4, %v1028_v61 }
 0x333   : > { %v4372_v5 = vpack.c.bf16 %v1034_v60, %v1029_v63  ;;  %v4430_v60 = vsel %vm1714_vm11, 1.0, %v3803_v2 }
 0x334   : > { %v1717_v63 = vmul.f32 %v4430_v60, %v4362_v56  ;;  %v1718_v1 = vmul.f32 %v4358_v54, %v4430_v60 }
 0x335   : > { %3173 = vmatprep.subr.bf16.mxu1 %v4372_v5 }
 0x336   : > { %3175 = vmatpush3.bf16.msra.mxu1 %v4372_v5 }
 0x337   : > { %3177 = vmatprep.subr.bf16.mxu1 %v4360_v55 }
 0x3ee   : > { %v2885_v6 = vpop.f32.mrb[2].mxu1 }
 0x3ef   : > { %v2553_v7 = vclamps-f32 %v2885_v6, 5.0  ;;  %v1110_v8 = vpop.f32.mrb[3].mxu1 }
 0x3f0   : > { %v2552_v9 = vclamps-f32 %v1110_v8, 5.0 }
 0x3f1   : > { %v1125_v10 = vmul.f32 1.442695, %v2553_v7 }
 0x3f2   : > { %v1123_v11 = vmul.f32 1.442695, %v2552_v9 }
 0x3f4   : > { %3406 = vpow2.f32 %v1123_v11 }
 0x3f5   : > { %3408 = vpow2.f32 %v1125_v10 }
 0x3fe   : > { %v3407_v13 = vpop.eup %3406 }
 0x3ff   : > { %v1127_v4 = vmul.f32 %v3407_v13, %v4377_v12  ;;  %v3409_v14 = vpop.eup %3408 }
 0x400   : > { %v1128_v16 = vmul.f32 %v3409_v14, %v4380_v15 }
 0x401   : > { %1129 = vxpose.xlu0.b32.start [1/2] (short) (narrow) %v1127_v4, 16 }
 0x405   : > { %1130 = vxpose.xlu0.b32.end [2/2] (short) (narrow) %v1128_v16, 16 }
 0x481   : > { %v1145_v17 = vpop.trf.xlu0 }
 0x482   : > { %2890 = vmatprep.mubr.msk.f32.mxu1 %vm1161_vm6, %v1145_v17 }
 0x485   : > { %v1146_v19 = vpop.trf.xlu0 }
 0x486   : > { %2891 = vmatmul.mubr.msk.f32.vlgmr.msra.gmra.mrb[4].mxu1 %vm1161_vm6, %v1146_v19 }
 0x487   : > { %3179 = vmatpush3.bf16.xpose.msra.mxu1 %v4360_v55  ;;  %2897 = vmatprep.mubr.f32.mxu1 %v1268_v20 }
 0x488   : > { %3181 = vmatprep.subr.bf16.mxu1 %v4372_v5 }
 0x48e   : > { %2898 = vmatmul.mubr.f32.vlgmr.msra.gmra.mrb[6].mxu1 %v1269_v21 }
 0x48f   : > { %3183 = vmatpush3.bf16.msra.mxu1 %v4372_v5 }
 0x490   : > { %3185 = vmatprep.subr.bf16.mxu1 %v4360_v55 }
 0x559   : > { %v4398_v22 = vpop.f32.mrb[4].mxu1 }
 0x55a   : > { %v4400_v23 = vpop.f32.mrb[5].mxu1  ;;  %v1244_v17 = vmax.f32 %v4398_v22, 1e-30 }
 0x55b   : > { %v1243_v53 = vmax.f32 %v4400_v23, 1e-30 }
 0x561   : > { %v2899_v24 = vpop.f32.mrb[6].mxu1 }
 0x562   : > { %v2558_v25 = vclamps-f32 %v2899_v24, 5.0  ;;  %v1336_v26 = vpop.f32.mrb[7].mxu1 }
 0x563   : > { %v2557_v27 = vclamps-f32 %v1336_v26, 5.0 }
 0x564   : > { %v1351_v28 = vmul.f32 1.442695, %v2558_v25 }
 0x565   : > { %v1349_v29 = vmul.f32 1.442695, %v2557_v27 }
 0x567   : > { %3410 = vpow2.f32 %v1349_v29 }
 0x568   : > { %3412 = vpow2.f32 %v1351_v28  ;;  %v1245_v28 = vmul.f32 %v4356_v52, %v4400_v23 }
 0x571   : > { %v3411_v30 = vpop.eup %3410 }
 0x572   : > { %v1353_v32 = vmul.f32 %v3411_v30, %v4377_v12  ;;  %v3413_v33 = vpop.eup %3412 }
 0x573   : > { %v1354_v34 = vmul.f32 %v3413_v33, %v4380_v15 }
 0x574   : > { %1355 = vxpose.xlu1.b32.start [1/2] (short) (narrow) %v1353_v32, 16 }
 0x578   : > { %1356 = vxpose.xlu1.b32.end [2/2] (short) (narrow) %v1354_v34, 16 }
 0x5f4   : > { %v1371_v35 = vpop.trf.xlu1 }
 0x5f5   : > { %2904 = vmatprep.mubr.msk.f32.mxu1 %vm1161_vm6, %v1371_v35 }
 0x5f8   : > { %v1372_v37 = vpop.trf.xlu1 }
 0x5f9   : > { %2905 = vmatmul.mubr.msk.f32.vlgmr.msra.gmra.mrb[8].mxu1 %vm1161_vm6, %v1372_v37  ;;  %v1246_v37 = vmul.f32 %v4398_v22, %v4356_v52 }
 0x5fa   : > { %3187 = vmatpush3.bf16.xpose.msra.mxu1 %v4360_v55  ;;  %2911 = vmatprep.mubr.f32.mxu1 %v1493_v38 }
 0x5fb   : > { %3189 = vmatprep.subr.bf16.mxu1 %v4372_v5 }
 0x601   : > { %2912 = vmatmul.mubr.f32.vlgmr.msra.gmra.mrb[10].mxu1 %v1494_v39 }
 0x602   : > { %3191 = vmatpush3.bf16.msra.mxu1 %v4372_v5 }
 0x603   : > { %3193 = vmatprep.subr.bf16.mxu1 %v4360_v55 }
 0x6cc   : > { %v4419_v40 = vpop.f32.mrb[8].mxu1 }
 0x6cd   : > { %v4421_v41 = vpop.f32.mrb[9].mxu1  ;;  %v1469_v19 = vmax.f32 %v4419_v40, 1e-30  ;;  %v1471_v38 = vmul.f32 %v4419_v40, %v4386_v18  ;;  %v1938_v40 = vld [vmem:[%s4261_s1 + $0x8] sm:$0xff] }
 0x6ce   : > { %v1468_v16 = vmax.f32 %v4421_v41, 1e-30  ;;  %v1470_v29 = vmul.f32 %v4386_v18, %v4421_v41  ;;  %v1937_v18 = vld [vmem:[%s4261_s1] sm:$0xff] }
 0x6d4   : > { %v2913_v42 = vpop.f32.mrb[10].mxu1 }
 0x6d5   : > { %v2563_v43 = vclamps-f32 %v2913_v42, 5.0  ;;  %v1561_v44 = vpop.f32.mrb[11].mxu1 }
 0x6d6   : > { %v2562_v45 = vclamps-f32 %v1561_v44, 5.0 }
 0x6d7   : > { %v1576_v46 = vmul.f32 1.442695, %v2563_v43 }
 0x6d8   : > { %v1574_v47 = vmul.f32 1.442695, %v2562_v45 }
 0x6da   : > { %3414 = vpow2.f32 %v1574_v47 }
 0x6db   : > { %3416 = vpow2.f32 %v1576_v46 }
 0x6dc   : > { %3418 = vrcp.f32 %v1243_v53 }
 0x6e4   : > { %v3415_v48 = vpop.eup %3414 }
 0x6e5   : > { %v1578_v49 = vmul.f32 %v3415_v48, %v4377_v12  ;;  %v3417_v50 = vpop.eup %3416 }
 0x6e6   : > { %v1579_v51 = vmul.f32 %v3417_v50, %v4380_v15  ;;  %v3419_v57 = vpop.eup %3418  ;;  %v3200_v50 = vpack.c.bf16 %v1938_v40, %v1937_v18 }
 0x6e7   : > { %1580 = vxpose.xlu0.b32.start [1/2] (short) (narrow) %v1578_v49, 16  ;;  %v1939_v49 = vld [vmem:[%s4261_s1 + $0x10] sm:$0xff] }
 0x6e8   : > { %3201 = vmatprep.subr.bf16.mxu0 %v3200_v50 }
 0x6e9   : > { %3203 = vmatpush3.bf16.msra.mxu0 %v3200_v50 }
 0x6eb   : > { %1581 = vxpose.xlu0.b32.end [2/2] (short) (narrow) %v1579_v51, 16  ;;  %v1940_v51 = vld [vmem:[%s4261_s1 + $0x18] sm:$0xff] }
 0x6ec   : > { %v3204_v53 = vpack.c.bf16 %v1940_v51, %v1939_v49  ;;  %v2078_v51 = vld [vmem:[%s4263_s30 + $0x30] sm:$0xff] }
 0x6ee   : > { %3205 = vmatprep.subr.bf16.mxu0 %v3204_v53 }
 0x6ef   : > { %3207 = vmatpush3.bf16.msra.mxu0 %v3204_v53  ;;  %v2079_v53 = vld [vmem:[%s4263_s30 + $0x38] sm:$0xff] }
 0x714   : > { %3404 = vset.pattern.permute.xlu0 %v3804_v58 }
 0x715   : > { %1251 = vperm.xlu0 %3404, %v3419_v57   ;;  %v1941_v57 = vld [vmem:[%s4261_s1 + $0x20] sm:$0xff] }
 0x767   : > { %v1596_v59 = vpop.trf.xlu0 }
 0x768   : > { %2918 = vmatprep.mubr.msk.f32.mxu1 %vm1161_vm6, %v1596_v59  ;;  %v1943_v59 = vld [vmem:[%s4261_s1 + $0x30] sm:$0xff] }
 0x76b   : > { %v1597_v61 = vpop.trf.xlu0 }
 0x76c   : > { %2919 = vmatmul.mubr.msk.f32.vlgmr.msra.gmra.mrb[12].mxu1 %vm1161_vm6, %v1597_v61  ;;  %v1944_v61 = vld [vmem:[%s4261_s1 + $0x38] sm:$0xff] }
 0x76d   : > { %3195 = vmatpush3.bf16.xpose.msra.mxu1 %v4360_v55  ;;  %2925 = vmatprep.mubr.f32.mxu1 %v1717_v63  ;;  %v3212_v63 = vpack.c.bf16 %v1944_v61, %v1943_v59  ;;  %v2082_v61 = vld [vmem:[%s4263_s30 + $0x50] sm:$0xff] }
 0x76e   : > { %3197 = vmatprep.subr.bf16.mxu1 %v4372_v5 }
 0x774   : > { %2926 = vmatmul.mubr.f32.vlgmr.msra.gmra.mrb[14].mxu1 %v1718_v1  ;;  %v1945_v1 = vld [vmem:[%s4261_s1 + $0x40] sm:$0xff] }
 0x775   : > { %3199 = vmatpush3.bf16.msra.mxu1 %v4372_v5 }
 0x794   : > { %v1252_v27 = vpop.permute.xlu0 %1251 }
 0x795   : > { %v1259_v32 = vmul.f32 %v1252_v27, %v1245_v28  ;;  %v4477_v28 = vshrl.u32 %v645_v0, 7  ;;  %v2072_v0 = vld [vmem:[%s4263_s30] sm:$0xff] }
 0x83f   : > { %v2920_v2 = vpop.f32.mrb[12].mxu1 }
 0x840   : > { %v1694_v6 = vmax.f32 %v2920_v2, 1e-30  ;;  %v1684_v7 = vpop.f32.mrb[13].mxu1  ;;  %v1696_v42 = vmul.f32 %v2920_v2, %v4407_v36  ;;  %v1946_v2 = vld [vmem:[%s4261_s1 + $0x48] sm:$0xff] }
 0x841   : > { %v1693_v20 = vmax.f32 %v1684_v7, 1e-30  ;;  %v1695_v44 = vmul.f32 %v4407_v36, %v1684_v7  ;;  %v1947_v7 = vld [vmem:[%s4261_s1 + $0x50] sm:$0xff] }
 0x842   : > { %3420 = vrcp.f32 %v1694_v6  ;;  %v3216_v6 = vpack.c.bf16 %v1946_v2, %v1945_v1  ;;  %v2084_v2 = vld [vmem:[%s4263_s30 + $0x60] sm:$0xff] }
 0x847   : > { %v2927_v8 = vpop.f32.mrb[14].mxu1 }
 0x848   : > { %v2568_v9 = vclamps-f32 %v2927_v8, 5.0  ;;  %v1785_v56 = vpop.f32.mrb[15].mxu1  ;;  %v1948_v8 = vld [vmem:[%s4261_s1 + $0x58] sm:$0xff] }
 0x849   : > { %v2567_v10 = vclamps-f32 %v1785_v56, 5.0  ;;  %v1949_v56 = vld [vmem:[%s4261_s1 + $0x60] sm:$0xff] }
 0x84a   : > { %v1800_v11 = vmul.f32 1.442695, %v2568_v9  ;;  %v3220_v9 = vpack.c.bf16 %v1948_v8, %v1947_v7  ;;  %v2086_v8 = vld [vmem:[%s4263_s30 + $0x70] sm:$0xff] }
 0x84b   : > { %v1798_v13 = vmul.f32 1.442695, %v2567_v10  ;;  %v1950_v10 = vld [vmem:[%s4261_s1 + $0x68] sm:$0xff] }
 0x84c   : > { %v3421_v55 = vpop.eup %3420 }
 0x84d   : > { %3422 = vpow2.f32 %v1798_v13  ;;  %1706 = vperm.xlu0 %3404, %v3421_v55  }
 0x84e   : > { %3424 = vpow2.f32 %v1800_v11  ;;  %v3224_v11 = vpack.c.bf16 %v1950_v10, %v1949_v56  ;;  %v2169_v10 = vld [vmem:[%s4289_s27] sm:$0xff] }
 0x84f   : > { %3426 = vrcp.f32 %v1468_v16  ;;  %v1952_v16 = vld [vmem:[%s4261_s1 + $0x78] sm:$0xff] }
 0x850   : > { %3428 = vrcp.f32 %v1244_v17 }
 0x851   : > { %3430 = vrcp.f32 %v1469_v19 }
 0x852   : > { %3432 = vrcp.f32 %v1693_v20 }
 0x857   : > { %v3423_v4 = vpop.eup %3422 }
 0x858   : > { %v1802_v54 = vmul.f32 %v3423_v4, %v4377_v12  ;;  %v3425_v14 = vpop.eup %3424 }
 0x859   : > { %v1803_v5 = vmul.f32 %v3425_v14, %v4380_v15  ;;  %v3427_v21 = vpop.eup %3426 }
 0x85a   : > { %1804 = vxpose.xlu1.b32.start [1/2] (short) (narrow) %v1802_v54, 16  ;;  %v3429_v12 = vpop.eup %3428 }
 0x85b   : > { %v3431_v24 = vpop.eup %3430 }
 0x85c   : > { %v3433_v15 = vpop.eup %3432 }
 0x85e   : > { %1805 = vxpose.xlu1.b32.end [2/2] (short) (narrow) %v1803_v5, 16  ;;  %v1951_v5 = vld [vmem:[%s4261_s1 + $0x70] sm:$0xff] }
 0x85f   : > { %v3228_v19 = vpack.c.bf16 %v1952_v16, %v1951_v5  ;;  %v2174_v5 = vld [vmem:[%s4289_s27 + $0x28] sm:$0xff] }
 0x87c   : > { %3405 = vset.pattern.permute.xlu1 %v3804_v58  ;;  %v1942_v58 = vld [vmem:[%s4261_s1 + $0x28] sm:$0xff] }
 0x87d   : > { %1476 = vperm.xlu1 %3405, %v3427_v21   ;;  %v3208_v36 = vpack.c.bf16 %v1942_v58, %v1941_v57  ;;  %v3244_v57 = vpack.c.bf16 %v2079_v53, %v2078_v51  ;;  %v2080_v58 = vld [vmem:[%s4263_s30 + $0x40] sm:$0xff] }
 0x87f   : > { %3209 = vmatprep.subr.bf16.mxu0 %v3208_v36 }
 0x880   : > { %3211 = vmatpush3.bf16.msra.mxu0 %v3208_v36  ;;  %v2081_v36 = vld [vmem:[%s4263_s30 + $0x48] sm:$0xff] }
 0x881   : > { %1256 = vperm.xlu1 %3405, %v3429_v12   ;;  %3213 = vmatprep.subr.bf16.mxu0 %v3212_v63  ;;  %v3248_v59 = vpack.c.bf16 %v2081_v36, %v2080_v58  ;;  %v2187_v36 = vsub.s32 4, %v4477_v28 }
 0x884   : > { %3215 = vmatpush3.bf16.msra.mxu0 %v3212_v63  ;;  %v2083_v63 = vld [vmem:[%s4263_s30 + $0x58] sm:$0xff] }
 0x885   : > { %1481 = vperm.xlu1 %3405, %v3431_v24   ;;  %3217 = vmatprep.subr.bf16.mxu0 %v3216_v6  ;;  %v3252_v1 = vpack.c.bf16 %v2083_v63, %v2082_v61 }
 0x888   : > { %3219 = vmatpush3.bf16.msra.mxu0 %v3216_v6  ;;  %v2085_v6 = vld [vmem:[%s4263_s30 + $0x68] sm:$0xff] }
 0x889   : > { %1701 = vperm.xlu1 %3405, %v3433_v15   ;;  %3221 = vmatprep.subr.bf16.mxu0 %v3220_v9  ;;  %v3256_v7 = vpack.c.bf16 %v2085_v6, %v2084_v2 }
 0x88c   : > { %3223 = vmatpush3.bf16.msra.mxu0 %v3220_v9  ;;  %v2087_v9 = vld [vmem:[%s4263_s30 + $0x78] sm:$0xff] }
 0x88d   : > { %3225 = vmatprep.subr.bf16.mxu0 %v3224_v11  ;;  %v3260_v56 = vpack.c.bf16 %v2087_v9, %v2086_v8 }
 0x890   : > { %3227 = vmatpush3.bf16.msra.mxu0 %v3224_v11  ;;  %v2170_v11 = vld [vmem:[%s4289_s27 + $0x8] sm:$0xff] }
 0x891   : > { %3229 = vmatprep.subr.bf16.mxu0 %v3228_v19 }
 0x894   : > { %3231 = vmatpush3.bf16.msra.mxu0 %v3228_v19  ;;  %v2176_v19 = vld [vmem:[%s4289_s27 + $0x38] sm:$0xff] }
 0x8cc   : > { %v1707_v39 = vpop.permute.xlu0 %1706 }
 0x8cd   : > { %v1710_v45 = vmul.f32 %v1707_v39, %v1696_v42  ;;  %v2073_v39 = vld [vmem:[%s4263_s30 + $0x8] sm:$0xff] }
 0x8ce   : > { %v3232_v42 = vpack.c.bf16 %v2073_v39, %v2072_v0  ;;  %v2062_v0 = vsub.s32 1, %v4477_v28  ;;  %v2068_v39 = vsub.s32 2, %v4477_v28 }
 0x8d0   : > { %3233 = vmatprep.subr.bf16.mxu1 %v3232_v42 }
 0x8da   : > { %v1820_v25 = vpop.trf.xlu1 }
 0x8db   : > { %2932 = vmatprep.mubr.msk.f32.mxu1 %vm1161_vm6, %v1820_v25 }
 0x8de   : > { %v1821_v26 = vpop.trf.xlu1 }
 0x8df   : > { %2933 = vmatmul.mubr.msk.f32.vlgmr.msra.gmra.mrb[16].mxu1 %vm1161_vm6, %v1821_v26 }
 0x8e0   : > { %3235 = vmatpush3.bf16.msra.mxu1 %v3232_v42 }
 0x8fc   : > { %v1477_v30 = vpop.permute.xlu1 %1476 }
 0x8fd   : > { %v1484_v33 = vmul.f32 %v1477_v30, %v1470_v29  ;;  %v2032_v29 = vsub.s32 0, %v4477_v28  ;;  %v4481_v30 = vld [vmem:[%s4279_s8] sm:$0xff] }
 0x8ff   : > { %v1486_v34 = vadd.f32 %v1484_v33, %v1259_v32 }
 0x900   : > { %v1257_v35 = vpop.permute.xlu1 %1256 }
 0x901   : > { %v1260_v41 = vmul.f32 %v1257_v35, %v1246_v37 }
 0x904   : > { %v1482_v23 = vpop.permute.xlu1 %1481 }
 0x905   : > { %v1485_v43 = vmul.f32 %v1482_v23, %v1471_v38  ;;  %v2074_v23 = vld [vmem:[%s4263_s30 + $0x10] sm:$0xff] }
 0x907   : > { %v1487_v46 = vadd.f32 %v1485_v43, %v1260_v41  ;;  %v2075_v41 = vld [vmem:[%s4263_s30 + $0x18] sm:$0xff] }
 0x908   : > { %v1702_v47 = vpop.permute.xlu1 %1701  ;;  %v3236_v43 = vpack.c.bf16 %v2075_v41, %v2074_v23  ;;  %v2063_v23 = vrot.slane %v4481_v30, %v2062_v0 }
 0x909   : > { %v1709_v52 = vmul.f32 %v1702_v47, %v1695_v44  ;;  %v1712_v22 = vadd.f32 %v1710_v45, %v1487_v46  ;;  %v2076_v44 = vld [vmem:[%s4263_s30 + $0x20] sm:$0xff]  ;;  %v2077_v45 = vld [vmem:[%s4263_s30 + $0x28] sm:$0xff] }
 0x90a   : > { %3237 = vmatprep.subr.bf16.mxu1 %v3236_v43  ;;  %v3240_v46 = vpack.c.bf16 %v2077_v45, %v2076_v44  ;;  %v2069_v45 = vrot.slane %v4481_v30, %v2068_v39 }
 0x90b   : > { %v1711_v48 = vadd.f32 %v1709_v52, %v1486_v34  ;;  %3239 = vmatpush3.bf16.msra.mxu1 %v3236_v43 }
 0x90c   : > { %3241 = vmatprep.subr.bf16.mxu1 %v3240_v46 }
 0x90f   : > { %3243 = vmatpush3.bf16.msra.mxu1 %v3240_v46 }
 0x910   : > { %3245 = vmatprep.subr.bf16.mxu1 %v3244_v57 }
 0x913   : > { %3247 = vmatpush3.bf16.msra.mxu1 %v3244_v57 }
 0x914   : > { %3249 = vmatprep.subr.bf16.mxu1 %v3248_v59 }
 0x917   : > { %3251 = vmatpush3.bf16.msra.mxu1 %v3248_v59  ;;  %v2188_v59 = vrot.slane %v4481_v30, %v2187_v36 }
 0x918   : > { %3253 = vmatprep.subr.bf16.mxu1 %v3252_v1 }
 0x91b   : > { %3255 = vmatpush3.bf16.msra.mxu1 %v3252_v1 }
 0x91c   : > { %3257 = vmatprep.subr.bf16.mxu1 %v3256_v7 }
 0x91f   : > { %3259 = vmatpush3.bf16.msra.mxu1 %v3256_v7 }
 0x920   : > { %3261 = vmatprep.subr.bf16.mxu1 %v3260_v56 }
 0x923   : > { %3263 = vmatpush3.bf16.msra.mxu1 %v3260_v56 }
 0x9b2   : > { %v2934_v13 = vpop.f32.mrb[16].mxu1 }
 0x9b3   : > { %v1918_v55 = vmax.f32 %v2934_v13, 1e-30  ;;  %v1908_v4 = vpop.f32.mrb[17].mxu1  ;;  %v1920_v20 = vmul.f32 %v2934_v13, %v4430_v60  ;;  %v2171_v13 = vld [vmem:[%s4289_s27 + $0x10] sm:$0xff] }
 0x9b4   : > { %v1917_v54 = vmax.f32 %v1908_v4, 1e-30  ;;  %v1919_v21 = vmul.f32 %v4430_v60, %v1908_v4  ;;  %v2033_v60 = vrot.slane %v4481_v30, %v2032_v29  ;;  %v2172_v4 = vld [vmem:[%s4289_s27 + $0x18] sm:$0xff]  ;;  %v2182_v29 = vld [vmem:[%s4289_s27 + $0x68] sm:$0xff] }
 0x9b5   : > { %3434 = vrcp.f32 %v1918_v55  ;;  %v3264_v55 = vpack.c.bf16 %v2170_v11, %v2169_v10 }
 0x9b6   : > { %3436 = vrcp.f32 %v1917_v54  ;;  %v3268_v54 = vpack.c.bf16 %v2172_v4, %v2171_v13 }
 0x9b7   : > { %3265 = vmatprep.subr.bf16.mxu0 %v3264_v55 }
 0x9bf   : > { %v3435_v14 = vpop.eup %3434 }
 0x9c0   : > { %v3437_v17 = vpop.eup %3436  ;;  %1930 = vperm.xlu0 %3404, %v3435_v14   ;;  %v2173_v14 = vld [vmem:[%s4289_s27 + $0x20] sm:$0xff] }
 0x9c1   : > { %1925 = vperm.xlu1 %3405, %v3437_v17   ;;  %v3272_v16 = vpack.c.bf16 %v2174_v5, %v2173_v14  ;;  %v2175_v17 = vld [vmem:[%s4289_s27 + $0x30] sm:$0xff] }
 0xa3f   : > { %v1931_v12 = vpop.permute.xlu0 %1930 }
 0xa40   : > { %v1934_v24 = vmul.f32 %v1931_v12, %v1920_v20  ;;  %v1926_v15 = vpop.permute.xlu1 %1925  ;;  %v3276_v20 = vpack.c.bf16 %v2176_v19, %v2175_v17  ;;  %v2178_v12 = vld [vmem:[%s4289_s27 + $0x48] sm:$0xff] }
 0xa41   : > { %v1933_v25 = vmul.f32 %v1926_v15, %v1919_v21  ;;  %v2177_v21 = vld [vmem:[%s4289_s27 + $0x40] sm:$0xff]  ;;  %v2179_v15 = vld [vmem:[%s4289_s27 + $0x50] sm:$0xff] }
 0xa42   : > { %v1936_v26 = vadd.f32 %v1934_v24, %v1712_v22  ;;  %v3280_v24 = vpack.c.bf16 %v2178_v12, %v2177_v21  ;;  %v2292_v12 = vsub.s32 5, %v4477_v28 }
 0xa43   : > { %v1935_v27 = vadd.f32 %v1933_v25, %v1711_v48  ;;  %v2180_v25 = vld [vmem:[%s4289_s27 + $0x58] sm:$0xff] }
 0xa45   : > { %2967 = vmatprep.mubr.f32.mxu0 %v1935_v27  ;;  %v2181_v27 = vld [vmem:[%s4289_s27 + $0x60] sm:$0xff] }
 0xa46   : > { %2968 = vmatmul.mubr.f32.vlgmr.msra.gmra.mrb[4].mxu0 %v1936_v26  ;;  %v3284_v26 = vpack.c.bf16 %v2180_v25, %v2179_v15  ;;  %v2293_v15 = vrot.slane %v4481_v30, %v2292_v12 }
 0xa47   : > { %3267 = vmatpush3.bf16.msra.mxu0 %v3264_v55 }
 0xa48   : > { %3269 = vmatprep.subr.bf16.mxu0 %v3268_v54 }
 0xa4b   : > { %3271 = vmatpush3.bf16.msra.mxu0 %v3268_v54 }
 0xa4c   : > { %3273 = vmatprep.subr.bf16.mxu0 %v3272_v16 }
 0xa4f   : > { %3275 = vmatpush3.bf16.msra.mxu0 %v3272_v16 }
 0xa50   : > { %3277 = vmatprep.subr.bf16.mxu0 %v3276_v20 }
 0xa53   : > { %3279 = vmatpush3.bf16.msra.mxu0 %v3276_v20 }
 0xa54   : > { %3281 = vmatprep.subr.bf16.mxu0 %v3280_v24 }
 0xa57   : > { %3283 = vmatpush3.bf16.msra.mxu0 %v3280_v24  ;;  %v2298_v24 = vsub.s32 6, %v4477_v28 }
 0xa58   : > { %3285 = vmatprep.subr.bf16.mxu0 %v3284_v26 }
 0xa5b   : > { %3287 = vmatpush3.bf16.msra.mxu0 %v3284_v26 }
 0xb19   : > { %v2969_v32 = vpop.f32.mrb[4].mxu0 }
 0xb1a   : > { %v2029_v33 = vadd.f32 %v2969_v32, %v4336_v31  ;;  %v2019_v34 = vpop.f32.mrb[5].mxu0 }
 0xb1b   : > { %v2028_v35 = vadd.f32 %v2019_v34, %v4314_v62 }
 0xb1c   : > { %v2035_v37 = vadd.f32 %v2033_v60, %v2029_v33 }
 0xb1d   : > { %v2034_v38 = vadd.f32 %v2033_v60, %v2028_v35  ;;  %v3288_v60 = vpack.c.bf16 %v2182_v29, %v2181_v27  ;;  %v2299_v27 = vrot.slane %v4481_v30, %v2298_v24 }
 0xb1e   : > { %2038 = vadd.xlane.f32.xlu0 %v2035_v37 }
 0xb1f   : > { %2036 = vadd.xlane.f32.xlu1 %v2034_v38  ;;  %3289 = vmatprep.subr.bf16.mxu0 %v3288_v60 }
 0xb20   : > { %3291 = vmatpush3.bf16.msra.mxu0 %v3288_v60 }
 0xbab   : > { %v2039_v62 = vpop.xlane.xlu0 %2038 }
 0xbac   : > { %v2041_v31 = vmul.f32 0.03125, %v2039_v62  ;;  %v2037_v47 = vpop.xlane.xlu1 %2036 }
 0xbad   : > { %v2040_v52 = vmul.f32 0.03125, %v2037_v47 }
 0xbae   : > { %v2043_v22 = vsub.f32 %v2035_v37, %v2041_v31 }
 0xbaf   : > { %v2042_v48 = vsub.f32 %v2034_v38, %v2040_v52  ;;  %v2183_v52 = vld [vmem:[%s4289_s27 + $0x70] sm:$0xff] }
 0xbb0   : > { %v4493_v18 = vmul.f32 %v4284_v3, %v2043_v22  ;;  %v2184_v22 = vld [vmem:[%s4289_s27 + $0x78] sm:$0xff] }
 0xbb1   : > { %v4496_v40 = vmul.f32 %v4284_v3, %v2042_v48  ;;  %v3292_v48 = vpack.c.bf16 %v2184_v22, %v2183_v52 }
 0xbb2   : > { %v2047_v49 = vmul.f32 %v4493_v18, %v4493_v18 }
 0xbb3   : > { %v2046_v50 = vmul.f32 %v4496_v40, %v4496_v40  ;;  %3293 = vmatprep.subr.bf16.mxu0 %v3292_v48 }
 0xbb4   : > { %2050 = vadd.xlane.f32.xlu1 %v2047_v49  ;;  %3295 = vmatpush3.bf16.msra.mxu0 %v3292_v48  ;;  %v2090_v49 = vsub.s32 3, %v4477_v28 }
 0xbb5   : > { %2048 = vadd.xlane.f32.xlu0 %v2046_v50 }
 0xbb6   : > { %v2091_v50 = vrot.slane %v4481_v30, %v2090_v49 }
 0xc41   : > { %v2051_v32 = vpop.xlane.xlu1 %2050 }
 0xc42   : > { %v2053_v33 = vmul.f32 0.03125, %v2051_v32  ;;  %v2049_v34 = vpop.xlane.xlu0 %2048 }
 0xc43   : > { %v2052_v35 = vmul.f32 0.03125, %v2049_v34 }
 0xc44   : > { %v2055_v37 = vadd.f32 1e-05, %v2053_v33 }
 0xc45   : > { %v2054_v38 = vadd.f32 1e-05, %v2052_v35 }
 0xc46   : > { %3438 = vrsqrt.f32 %v2055_v37 }
 0xc47   : > { %3440 = vrsqrt.f32 %v2054_v38 }
 0xc50   : > { %v3439_v42 = vpop.eup %3438 }
 0xc51   : > { %v3441_v41 = vpop.eup %3440  ;;  %v2059_v43 = vmul.f32 %v3439_v42, %v4493_v18 }
 0xc52   : > { %v2058_v44 = vmul.f32 %v3441_v41, %v4496_v40 }
 0xc53   : > { %v2065_v46 = vmul.f32 %v2063_v23, %v2059_v43 }
 0xc54   : > { %v2064_v62 = vmul.f32 %v2063_v23, %v2058_v44 }
 0xc55   : > { %v2071_v47 = vadd.f32 %v2069_v45, %v2065_v46 }
 0xc56   : > { %v2070_v31 = vadd.f32 %v2069_v45, %v2064_v62 }
 0xc58   : > { %3002 = vmatprep.mubr.f32.mxu1 %v2070_v31 }
 0xc59   : > { %3003 = vmatmul.mubr.f32.vlgmr.msra.gmra.mrb[18].mxu1 %v2071_v47 }
 0xd2c   : > { %v3004_v18 = vpop.f32.mrb[18].mxu1 }
 0xd2d   : > { %v2164_v51 = vadd.f32 %v3004_v18, %v2091_v50  ;;  %v2158_v40 = vpop.f32.mrb[19].mxu1 }
 0xd2e   : > { %v2159_v53 = vadd.f32 %v2158_v40, %v2091_v50 }
 0xd2f   : > { %v2168_v58 = vmax.f32 %v2164_v51, 0.0 }
 0xd30   : > { %v2167_v57 = vmax.f32 %v2159_v53, 0.0 }
 0xd32   : > { %3037 = vmatprep.mubr.f32.mxu0 %v2167_v57 }
 0xd33   : > { %3038 = vmatmul.mubr.f32.vlgmr.msra.gmra.mrb[6].mxu0 %v2168_v58 }
 0xe06   : > { %v3039_v61 = vpop.f32.mrb[6].mxu0 }
 0xe07   : > { %v2261_v63 = vadd.f32 %v3039_v61, %v2188_v59  ;;  %v2255_v1 = vpop.f32.mrb[7].mxu0 }
 0xe08   : > { %v2256_v2 = vadd.f32 %v2255_v1, %v2188_v59 }
 0xe09   : > { %v2265_v6 = vadd.f32 %v2261_v63, %v2071_v47 }
 0xe0a   : > { %v2264_v7 = vadd.f32 %v2256_v2, %v2070_v31 }
 0xe0b   : > { %2268 = vadd.xlane.f32.xlu1 %v2265_v6 }
 0xe0c   : > { %2266 = vadd.xlane.f32.xlu0 %v2264_v7 }
 0xe98   : > { %v2269_v8 = vpop.xlane.xlu1 %2268 }
 0xe99   : > { %v2271_v9 = vmul.f32 0.03125, %v2269_v8  ;;  %v2267_v56 = vpop.xlane.xlu0 %2266 }
 0xe9a   : > { %v2270_v10 = vmul.f32 0.03125, %v2267_v56 }
 0xe9b   : > { %v2273_v11 = vsub.f32 %v2265_v6, %v2271_v9 }
 0xe9c   : > { %v2272_v13 = vsub.f32 %v2264_v7, %v2270_v10 }
 0xe9d   : > { %v2275_v55 = vmul.f32 %v4284_v3, %v2273_v11 }
 0xe9e   : > { %v2274_v4 = vmul.f32 %v4284_v3, %v2272_v13 }
 0xe9f   : > { %v2277_v54 = vmul.f32 %v2275_v55, %v2275_v55 }
 0xea0   : > { %v2276_v14 = vmul.f32 %v2274_v4, %v2274_v4 }
 0xea1   : > { %2280 = vadd.xlane.f32.xlu1 %v2277_v54 }
 0xea2   : > { %2278 = vadd.xlane.f32.xlu0 %v2276_v14 }
 0xf2e   : > { %v2281_v5 = vpop.xlane.xlu1 %2280 }
 0xf2f   : > { %v2283_v16 = vmul.f32 0.03125, %v2281_v5  ;;  %v2279_v17 = vpop.xlane.xlu0 %2278 }
 0xf30   : > { %v2282_v19 = vmul.f32 0.03125, %v2279_v17 }
 0xf31   : > { %v2285_v20 = vadd.f32 1e-05, %v2283_v16 }
 0xf32   : > { %v2284_v21 = vadd.f32 1e-05, %v2282_v19 }
 0xf33   : > { %3442 = vrsqrt.f32 %v2285_v20 }
 0xf34   : > { %3444 = vrsqrt.f32 %v2284_v21 }
 0xf3d   : > { %v3443_v3 = vpop.eup %3442 }
 0xf3e   : > { %v3445_v25 = vpop.eup %3444  ;;  %v2289_v26 = vmul.f32 %v3443_v3, %v2275_v55 }
 0xf3f   : > { %v2288_v29 = vmul.f32 %v3445_v25, %v2274_v4 }
 0xf40   : > { %v2295_v60 = vmul.f32 %v2293_v15, %v2289_v26 }
 0xf41   : > { %v2294_v32 = vmul.f32 %v2293_v15, %v2288_v29 }
 0xf42   : > { %v2301_v33 = vadd.f32 %v2299_v27, %v2295_v60 }
 0xf43   : > { %v2300_v34 = vadd.f32 %v2299_v27, %v2294_v32 }
 0xf44   : > { %2303 = vst [vmem:[#allocation17 + $0x8] sm:$0xff] %v2301_v33 }
 0xf45   : > { %2302 = vst [vmem:[#allocation17] sm:$0xff] %v2300_v34 }
 0xf46   : > { %3723 = shalt.err (!%p3720_p7)
}
 0xf47   : > { %s4648_s17 = sld [smem:[#allocation33_spill]] }
 0xf4d   : > { %s4649_s28 = smov %s4648_s17  ;;  %s3724_s19 = scalar_lea.hbm %s4648_s17, 256 }
 0xf4e   : > { %p3725_p9 = scmp.ne.s32.totalorder %s4649_s28, %s3724_s19  ;;  %p3730_p1 = scmp.lt.u32.totalorder %s3724_s19, %s4649_s28 }
 0xf50   : > { %p3726_p8 = pnand %p3725_p9, %p3360_p4 }
 0xf52   : > { %p3727_p11 = pneg %p3726_p8 }
 0xf54   : > { %p3732_p3 = pnand %p3730_p1, %p3727_p11 }
 0xf56   : > { %3735 = shalt.err (!%p3732_p3)
}
 0xf57   : > { %s3806_s12 = smov 128   ;;  %s3807_s30 = smov 8  }
 0xf58   : > { %3321 = dma.vmem_to_hbm [thread:$0]  (%p3360_p4), %s2311_s26, 256, %s4649_s28, [#allocation4], %s3806_s12, %s3806_s12, %s3807_s30  }
 0xf59   : > { %3773 = dma.done.wait (%p3360_p4), [#allocation4], 256  }
 0xf5a   : > { %3775 = vsyncadd (%p3360_p4), [#allocation4], 4294967040 }
 0xf5b PF: > { %s4650_s20 = sld [smem:[#allocation25_spill]]  ;;  %s4651_s23 = sld [smem:[#allocation24_spill]] }
 0xf5c   : > { %s4652_s19 = sld [smem:[#allocation26_spill]]  ;;  %s4653_s17 = smov %s3782_s18 }
 0xf61   : > { %p30_p12 = scmp.ge.s32.totalorder %s4650_s20, 4   ;;  %s4654_s18 = smov %s4651_s23 }
 0xf63   :  { %32 = sbr.rel (!%p30_p12) target bundleno = 18 (0x12), region = 180 }
 0xf6a   :  { %2326 = vsyncpa [#allocation3], 1 }
 0xf6b   :  { %2328 = vsyncpa [#allocation3 + $0x1], 1 }
 0xf6c   :  { %2329 = vsyncpa [#allocation6], 1 }
 0xf6d   :  { %2330 = vsyncpa [#allocation9], 1 }
 0xf6e   :  { %2332 = vsyncpa [#allocation9 + $0x1], 1 }
 0xf6f   :  { %2333 = vsyncpa [#allocation12], 1 }
 0xf70   :  { %2335 = vsyncpa [#allocation12 + $0x1], 1 }
 0xf71   :  { %2336 = vsyncpa [#allocation15], 1 }
 0xf72   :  { %2338 = vsyncpa [#allocation15 + $0x1], 1 }
 0xf73   :  { %2339 = vsyncpa [#allocation4], 1 }
 0xf74   :  { %2341 = vsyncpa [#allocation4 + $0x1], 1 }

</bundles_post_ra>
